<compile_context>
chip_gen: v6e
topology: v6e:2x2x1
jax: 0.10.0
libtpu: 0.0.40
codegen_flags: <defaults>
</compile_context>

<pallas_src>
import jax
import jax.numpy as jnp
from jax.experimental import pallas as pl
from jax.experimental.pallas import tpu as pltpu

BN_EPS = 1e-5


# ---------------------------------------------------------------------------
# Fused Pallas kernel: MLP tower + CrossNetMix + final FC + sigmoid
# ---------------------------------------------------------------------------
def _make_dcnv2_kernel(num_mlp_layers, cross_layer_num, expert_num, low_rank):
    ER = expert_num * low_rank   # width of the concatenated expert slab (64 in default cfg)

    def kernel(*refs):
        x_ref = refs[0]
        o_ref = refs[-1]
        w_refs = refs[1:1 + 2 * num_mlp_layers]
        (wvg_ref, ct_ref, ut_ref, expand_ref, cbias_ref,
         fcw_cross_ref, fcw_mlp_ref, fcb_ref) = refs[1 + 2 * num_mlp_layers:-1]

        x_bf = x_ref[...]                               # (TB, D0) bf16
        x0 = x_bf.astype(jnp.float32)

        # ---- deep (MLP) tower: Linear (BN folded) -> ReLU; Dropout = identity in eval
        h = x0
        for l in range(num_mlp_layers):
            z = jnp.dot(h.astype(jnp.bfloat16), w_refs[2 * l][...],
                        preferred_element_type=jnp.float32) + w_refs[2 * l + 1][...]
            h = jnp.maximum(z, 0.0)

        # ---- CrossNetMix: fused mixture of low-rank experts
        xl = x0
        for i in range(cross_layer_num):
            # one wide matmul: all expert V projections + gate logits (+ zero pad)
            z = jnp.dot(xl.astype(jnp.bfloat16), wvg_ref[i],
                        preferred_element_type=jnp.float32)            # (TB, CW)

            # softmax over the expert gate columns
            gl = z[:, ER:ER + expert_num]                               # (TB, E)
            gl = gl - jnp.max(gl, axis=-1, keepdims=True)
            ge = jnp.exp(gl)
            gate = ge * pl.reciprocal(jnp.sum(ge, axis=-1, keepdims=True),
                                      approx=True)                     # (TB, E)

            # tanh on the whole slab is harmless: the gate/pad rows of Ct are zero
            v = jnp.tanh(z)                                             # (TB, CW)
            c = jnp.tanh(jnp.dot(v.astype(jnp.bfloat16), ct_ref[i],
                                 preferred_element_type=jnp.float32))   # (TB, CW)

            # expand gate (TB,E) -> (TB,CW) block pattern via a tiny constant matmul
            gexp = jnp.dot(gate.astype(jnp.bfloat16), expand_ref[...],
                           preferred_element_type=jnp.float32)          # (TB, CW)
            u = jnp.dot((c * gexp).astype(jnp.bfloat16), ut_ref[i],
                        preferred_element_type=jnp.float32)             # (TB, D0)

            # gates sum to 1  =>  sum_e g_e*(x0*(u_e+b)) = x0*(sum_e g_e*u_e + b)
            xl = x0 * (u + cbias_ref[i]) + xl

        # ---- final FC as a VPU reduction epilogue (no 1-wide MXU RHS) + sigmoid
        logit = (jnp.sum(xl * fcw_cross_ref[...], axis=-1, keepdims=True)
                 + jnp.sum(h * fcw_mlp_ref[...], axis=-1, keepdims=True)
                 + fcb_ref[...])                                        # (TB, 1)
        o_ref[...] = jax.nn.sigmoid(logit).astype(o_ref.dtype)

    return kernel


def _resident_spec(arr):
    """Full-array block, constant index_map -> weight stays resident in VMEM."""
    nd = arr.ndim
    return pl.BlockSpec(arr.shape, lambda i, nd=nd: (0,) * nd)


def _choose_tile(batch):
    """Pick a large batch tile (MXU occupancy) that satisfies output-lane constraints."""
    if batch >= 256:
        tb = 256
    elif batch >= 128:
        tb = 128
    else:
        tb = max(16, ((batch + 15) // 16) * 16)   # bf16 sublane packing: multiple of 16
    b_pad = ((batch + tb - 1) // tb) * tb
    return tb, b_pad


# ---------------------------------------------------------------------------
# Forward wrapper
# ---------------------------------------------------------------------------
def dcnv2_forward(x_idx, params):
    # Embedding lookup (XLA gather) + flatten; emit in bf16 to halve the HBM round trip.
    idx = x_idx + params["offsets"][None, :]
    emb = jnp.take(params["emb"], idx, axis=0)                    # (B, F, E)
    B = x_idx.shape[0]
    h0 = emb.reshape(B, -1).astype(jnp.bfloat16)                  # (B, D0)
    D0 = h0.shape[1]

    TB, B_pad = _choose_tile(B)
    if B_pad != B:
        h0 = jnp.pad(h0, ((0, B_pad - B), (0, 0)))

    # ---- fold eval-mode BatchNorm into the Linear at trace time; weights in bf16
    mlp_flat = []
    for lp in params["mlp"]:
        scale = lp["gamma"] * jax.lax.rsqrt(lp["var"] + BN_EPS)   # (1, d_out)
        mlp_flat.append((lp["w"] * scale).astype(jnp.bfloat16))                  # w_eff
        mlp_flat.append((lp["b"] - lp["mean"]) * scale + lp["beta"])             # b_eff (f32)

    # ---- pack CrossNetMix weights lane-dense
    Vt, Ct, Ut, gw = params["Vt"], params["Ct"], params["Ut"], params["gw"]
    L, E, _, R = Vt.shape
    ER = E * R
    CW = ((ER + E + 127) // 128) * 128            # 128 in the default config

    # V + gate columns: (L, D0, CW) — cols [0:ER) per-expert V, [ER:ER+E) gate weights
    wvg = jnp.zeros((L, D0, CW), jnp.float32)
    wvg = wvg.at[:, :, :ER].set(Vt.transpose(0, 2, 1, 3).reshape(L, D0, ER))
    wvg = wvg.at[:, :, ER:ER + E].set(jnp.broadcast_to(gw[None], (L, D0, E)))
    wvg = wvg.astype(jnp.bfloat16)

    # block-diagonal C: (L, CW, CW)
    ct_blk = jnp.zeros((L, CW, CW), jnp.float32)
    for e in range(E):
        ct_blk = ct_blk.at[:, e * R:(e + 1) * R, e * R:(e + 1) * R].set(Ct[:, e])
    ct_blk = ct_blk.astype(jnp.bfloat16)

    # stacked U: (L, CW, D0)
    ut_cat = jnp.zeros((L, CW, D0), jnp.float32)
    ut_cat = ut_cat.at[:, :ER, :].set(Ut.reshape(L, ER, D0))
    ut_cat = ut_cat.astype(jnp.bfloat16)

    # gate -> expert-slab expansion matrix (E, CW)
    expand = jnp.zeros((E, CW), jnp.float32)
    for e in range(E):
        expand = expand.at[e, e * R:(e + 1) * R].set(1.0)
    expand = expand.astype(jnp.bfloat16)

    weight_inputs = mlp_flat + [
        wvg, ct_blk, ut_cat, expand, params["cbias"],
        params["fcw_cross"], params["fcw_mlp"], params["fcb"],
    ]

    kernel = _make_dcnv2_kernel(len(params["mlp"]), L, E, R)

    in_specs = [pl.BlockSpec((TB, D0), lambda i: (i, 0))]
    in_specs += [_resident_spec(a) for a in weight_inputs]

    out = pl.pallas_call(
        kernel,
        out_shape=jax.ShapeDtypeStruct((B_pad, 1), jnp.float32),
        grid=(B_pad // TB,),
        in_specs=in_specs,
        out_specs=pl.BlockSpec((TB, 1), lambda i: (i, 0)),
        compiler_params=pltpu.CompilerParams(
            dimension_semantics=("parallel",),
            vmem_limit_bytes=32 * 1024 * 1024),
    )(h0, *weight_inputs)
    return out[:B, 0]                                             # (B,)


# ---------------------------------------------------------------------------
# Deterministic parameter construction
# ---------------------------------------------------------------------------
def init_dcnv2_params(key, feature_fields, embed_dim, mlp_dims,
                      cross_layer_num=2, expert_num=4, low_rank=16):
    num_fields = len(feature_fields)
    vocab = int(sum(feature_fields)) + 1
    d0 = num_fields * embed_dim

    ks = iter(jax.random.split(key, 16))
    ff = jnp.asarray(feature_fields, jnp.int32)
    offsets = jnp.concatenate([jnp.zeros((1,), jnp.int32), jnp.cumsum(ff)[:-1]])

    params = {
        "offsets": offsets,
        "emb": jax.random.normal(next(ks), (vocab, embed_dim), jnp.float32)
               / jnp.sqrt(jnp.float32(embed_dim)),
    }

    mlp = []
    d_in = d0
    for d_out in mlp_dims:
        kw, kb, kg, kbt, km, kv = jax.random.split(next(ks), 6)
        mlp.append(dict(
            w=jax.random.normal(kw, (d_in, d_out), jnp.float32)
              / jnp.sqrt(jnp.float32(d_in)),
            b=jax.random.normal(kb, (1, d_out), jnp.float32) * 0.1,
            gamma=1.0 + jax.random.normal(kg, (1, d_out), jnp.float32) * 0.1,
            beta=jax.random.normal(kbt, (1, d_out), jnp.float32) * 0.1,
            # non-trivial running stats so eval-mode BN actually does something
            mean=jax.random.normal(km, (1, d_out), jnp.float32) * 0.1,
            var=1.0 + jnp.abs(jax.random.normal(kv, (1, d_out), jnp.float32)) * 0.1,
        ))
        d_in = d_out

    L, E, R = cross_layer_num, expert_num, low_rank
    params.update(
        mlp=mlp,
        # stored pre-transposed (V.T, C.T, U.T) so row-vector math is plain x @ W
        Vt=jax.random.normal(next(ks), (L, E, d0, R), jnp.float32)
           / jnp.sqrt(jnp.float32(d0)),
        Ct=jax.random.normal(next(ks), (L, E, R, R), jnp.float32)
           / jnp.sqrt(jnp.float32(R)),
        Ut=jax.random.normal(next(ks), (L, E, R, d0), jnp.float32)
           / jnp.sqrt(jnp.float32(R)),
        # torch inits this bias to zero; random here for a stronger numeric test
        cbias=jax.random.normal(next(ks), (L, 1, d0), jnp.float32) * 0.1,
        gw=jax.random.normal(next(ks), (d0, E), jnp.float32)
           / jnp.sqrt(jnp.float32(d0)),
        fcw_cross=jax.random.normal(next(ks), (1, d0), jnp.float32)
                  / jnp.sqrt(jnp.float32(d0 + mlp_dims[-1])),
        fcw_mlp=jax.random.normal(next(ks), (1, mlp_dims[-1]), jnp.float32)
                / jnp.sqrt(jnp.float32(d0 + mlp_dims[-1])),
        fcb=jax.random.normal(next(ks), (1, 1), jnp.float32) * 0.1,
    )
    return params


# ---------------------------------------------------------------------------
# Pure-JAX f32 reference (unfused experts, explicit loop) — mirrors the PyTorch code
# ---------------------------------------------------------------------------
def _reference_forward(x_idx, params):
    idx = x_idx + params["offsets"][None, :]
    h0 = params["emb"][idx].reshape(x_idx.shape[0], -1)

    # deep tower
    h = h0
    for lp in params["mlp"]:
        z = h @ lp["w"] + lp["b"]
        z = (z - lp["mean"]) * jax.lax.rsqrt(lp["var"] + BN_EPS) * lp["gamma"] + lp["beta"]
        h = jnp.maximum(z, 0.0)

    # CrossNetMix
    vt, ct, ut = params["Vt"], params["Ct"], params["Ut"]
    L, E = vt.shape[0], vt.shape[1]
    x0, xl = h0, h0
    for i in range(L):
        gate = jax.nn.softmax(xl @ params["gw"], axis=-1)          # (B, E)
        moe = jnp.zeros_like(xl)
        for e in range(E):
            v = jnp.tanh(xl @ vt[i, e])
            c = jnp.tanh(v @ ct[i, e])
            u = c @ ut[i, e]
            moe = moe + (x0 * (u + params["cbias"][i])) * gate[:, e:e + 1]
        xl = moe + xl

    cat = jnp.concatenate([xl, h], axis=1)
    fcw = jnp.concatenate([params["fcw_cross"], params["fcw_mlp"]], axis=1)
    logit = cat @ fcw.T + params["fcb"]
    return jax.nn.sigmoid(logit[:, 0])


# ---------------------------------------------------------------------------
if __name__ == "__main__":
    key = jax.random.PRNGKey(0)
    kx, kp = jax.random.split(key)

    feature_fields = (10, 20, 30, 40, 15, 25, 35, 45)   # 8 fields, vocab = 221
    embed_dim = 16                                       # embedding_out_dim = 128 (lane-dense)
    mlp_dims = (128, 128)
    batch = 160                                          # -> TB=128, padded to 256, 2 grid steps

    params = init_dcnv2_params(kp, feature_fields, embed_dim, mlp_dims)

    maxes = jnp.asarray(feature_fields, jnp.int32)
    x_idx = jax.random.randint(kx, (batch, len(feature_fields)), 0,
                               maxes[None, :], dtype=jnp.int32)

    fwd = jax.jit(dcnv2_forward)
    y = jax.block_until_ready(fwd(x_idx, params))
    y_ref = _reference_forward(x_idx, params)

    assert y.shape == (batch,), y.shape
    assert bool(jnp.all(jnp.isfinite(y)))
    max_err = float(jnp.max(jnp.abs(y - y_ref)))
    # bf16 MXU operands -> loosened tolerance (outputs are probabilities in [0,1])
    assert bool(jnp.allclose(y, y_ref, atol=3e-2, rtol=3e-2)), max_err

    print("KERNEL_OK")
</pallas_src>

<mosaic_0001>
module attributes {stable_mosaic.version = 11 : i64} {
  func.func @kernel(%arg0: i32, %arg1: memref<128x128xbf16, #tpu.memory_space<vmem>>, %arg2: memref<128x128xbf16, #tpu.memory_space<vmem>>, %arg3: memref<1x128xf32, #tpu.memory_space<vmem>>, %arg4: memref<128x128xbf16, #tpu.memory_space<vmem>>, %arg5: memref<1x128xf32, #tpu.memory_space<vmem>>, %arg6: memref<2x128x128xbf16, #tpu.memory_space<vmem>>, %arg7: memref<2x128x128xbf16, #tpu.memory_space<vmem>>, %arg8: memref<2x128x128xbf16, #tpu.memory_space<vmem>>, %arg9: memref<4x128xbf16, #tpu.memory_space<vmem>>, %arg10: memref<2x1x128xf32, #tpu.memory_space<vmem>>, %arg11: memref<1x128xf32, #tpu.memory_space<vmem>>, %arg12: memref<1x128xf32, #tpu.memory_space<vmem>>, %arg13: memref<1x1xf32, #tpu.memory_space<vmem>>, %arg14: memref<128x1xf32, #tpu.memory_space<vmem>>) attributes {dimension_semantics = [#tpu.dimension_semantics<parallel>], iteration_bounds = array<i64: 2>, scalar_prefetch = 0 : i64, scratch_operands = 0 : i64, tpu.core_type = #tpu.core_type<tc>, window_params = [{transform_indices = @transform_0, window_bounds = array<i64: 128, 128>}, {pipeline_mode = #tpu.pipeline_mode<synchronous>, transform_indices = @transform_1, window_bounds = array<i64: 128, 128>}, {pipeline_mode = #tpu.pipeline_mode<synchronous>, transform_indices = @transform_2, window_bounds = array<i64: 1, 128>}, {pipeline_mode = #tpu.pipeline_mode<synchronous>, transform_indices = @transform_3, window_bounds = array<i64: 128, 128>}, {pipeline_mode = #tpu.pipeline_mode<synchronous>, transform_indices = @transform_4, window_bounds = array<i64: 1, 128>}, {pipeline_mode = #tpu.pipeline_mode<synchronous>, transform_indices = @transform_5, window_bounds = array<i64: 2, 128, 128>}, {pipeline_mode = #tpu.pipeline_mode<synchronous>, transform_indices = @transform_6, window_bounds = array<i64: 2, 128, 128>}, {pipeline_mode = #tpu.pipeline_mode<synchronous>, transform_indices = @transform_7, window_bounds = array<i64: 2, 128, 128>}, {pipeline_mode = #tpu.pipeline_mode<synchronous>, transform_indices = @transform_8, window_bounds = array<i64: 4, 128>}, {pipeline_mode = #tpu.pipeline_mode<synchronous>, transform_indices = @transform_9, window_bounds = array<i64: 2, 1, 128>}, {pipeline_mode = #tpu.pipeline_mode<synchronous>, transform_indices = @transform_10, window_bounds = array<i64: 1, 128>}, {pipeline_mode = #tpu.pipeline_mode<synchronous>, transform_indices = @transform_11, window_bounds = array<i64: 1, 128>}, {pipeline_mode = #tpu.pipeline_mode<synchronous>, transform_indices = @transform_12, window_bounds = array<i64: 1, 1>}, {transform_indices = @transform_13, window_bounds = array<i64: 128, 1>}]} {
    %c0 = arith.constant 0 : index
    %c0_0 = arith.constant 0 : index
    %0 = vector.load %arg1[%c0, %c0_0] : memref<128x128xbf16, #tpu.memory_space<vmem>>, vector<128x128xbf16>
    %1 = arith.extf %0 : vector<128x128xbf16> to vector<128x128xf32>
    %2 = arith.truncf %1 : vector<128x128xf32> to vector<128x128xbf16>
    %c0_1 = arith.constant 0 : index
    %c0_2 = arith.constant 0 : index
    %3 = vector.load %arg2[%c0_1, %c0_2] : memref<128x128xbf16, #tpu.memory_space<vmem>>, vector<128x128xbf16>
    %cst = arith.constant dense<0.000000e+00> : vector<128x128xf32>
    %4 = tpu.matmul %2, %3, %cst {dimension_numbers = #tpu.dot_dimension_numbers<[1], [0], [0], [1], [0, 0, 1, 1], [], []>} : vector<128x128xbf16>, vector<128x128xbf16>, vector<128x128xf32> -> vector<128x128xf32>
    %c0_3 = arith.constant 0 : index
    %c0_4 = arith.constant 0 : index
    %5 = vector.load %arg3[%c0_3, %c0_4] : memref<1x128xf32, #tpu.memory_space<vmem>>, vector<1x128xf32>
    %6 = vector.broadcast %5 : vector<1x128xf32> to vector<128x128xf32>
    %7 = arith.addf %4, %6 : vector<128x128xf32>
    %cst_5 = arith.constant 0.000000e+00 : f32
    %8 = vector.broadcast %cst_5 : f32 to vector<128x128xf32>
    %9 = arith.maximumf %7, %8 : vector<128x128xf32>
    %10 = arith.truncf %9 : vector<128x128xf32> to vector<128x128xbf16>
    %c0_6 = arith.constant 0 : index
    %c0_7 = arith.constant 0 : index
    %11 = vector.load %arg4[%c0_6, %c0_7] : memref<128x128xbf16, #tpu.memory_space<vmem>>, vector<128x128xbf16>
    %cst_8 = arith.constant dense<0.000000e+00> : vector<128x128xf32>
    %12 = tpu.matmul %10, %11, %cst_8 {dimension_numbers = #tpu.dot_dimension_numbers<[1], [0], [0], [1], [0, 0, 1, 1], [], []>} : vector<128x128xbf16>, vector<128x128xbf16>, vector<128x128xf32> -> vector<128x128xf32>
    %c0_9 = arith.constant 0 : index
    %c0_10 = arith.constant 0 : index
    %13 = vector.load %arg5[%c0_9, %c0_10] : memref<1x128xf32, #tpu.memory_space<vmem>>, vector<1x128xf32>
    %14 = vector.broadcast %13 : vector<1x128xf32> to vector<128x128xf32>
    %15 = arith.addf %12, %14 : vector<128x128xf32>
    %cst_11 = arith.constant 0.000000e+00 : f32
    %16 = vector.broadcast %cst_11 : f32 to vector<128x128xf32>
    %17 = arith.maximumf %15, %16 : vector<128x128xf32>
    %18 = arith.truncf %1 : vector<128x128xf32> to vector<128x128xbf16>
    %c0_12 = arith.constant 0 : index
    %c0_13 = arith.constant 0 : index
    %c0_14 = arith.constant 0 : index
    %19 = vector.load %arg6[%c0_12, %c0_13, %c0_14] : memref<2x128x128xbf16, #tpu.memory_space<vmem>>, vector<1x128x128xbf16>
    %20 = vector.shape_cast %19 : vector<1x128x128xbf16> to vector<128x128xbf16>
    %cst_15 = arith.constant dense<0.000000e+00> : vector<128x128xf32>
    %21 = tpu.matmul %18, %20, %cst_15 {dimension_numbers = #tpu.dot_dimension_numbers<[1], [0], [0], [1], [0, 0, 1, 1], [], []>} : vector<128x128xbf16>, vector<128x128xbf16>, vector<128x128xf32> -> vector<128x128xf32>
    %22 = vector.extract_strided_slice %21 {offsets = [0, 64], sizes = [128, 4], strides = [1, 1]} : vector<128x128xf32> to vector<128x4xf32>
    %cst_16 = arith.constant dense<0xFF800000> : vector<128xf32>
    %23 = vector.multi_reduction <maximumf>, %22, %cst_16 [1] : vector<128x4xf32> to vector<128xf32>
    %24 = vector.shape_cast %23 : vector<128xf32> to vector<128x1xf32>
    %25 = vector.broadcast %24 : vector<128x1xf32> to vector<128x4xf32>
    %26 = arith.subf %22, %25 : vector<128x4xf32>
    %27 = math.exp %26 : vector<128x4xf32>
    %cst_17 = arith.constant dense<0.000000e+00> : vector<128xf32>
    %28 = vector.multi_reduction <add>, %27, %cst_17 [1] : vector<128x4xf32> to vector<128xf32>
    %29 = vector.shape_cast %28 : vector<128xf32> to vector<128x1xf32>
    %30 = tpu.reciprocal %29 {approx = true} : vector<128x1xf32> -> vector<128x1xf32>
    %31 = vector.broadcast %30 : vector<128x1xf32> to vector<128x4xf32>
    %32 = arith.mulf %27, %31 : vector<128x4xf32>
    %33 = math.tanh %21 : vector<128x128xf32>
    %34 = arith.truncf %33 : vector<128x128xf32> to vector<128x128xbf16>
    %c0_18 = arith.constant 0 : index
    %c0_19 = arith.constant 0 : index
    %c0_20 = arith.constant 0 : index
    %35 = vector.load %arg7[%c0_18, %c0_19, %c0_20] : memref<2x128x128xbf16, #tpu.memory_space<vmem>>, vector<1x128x128xbf16>
    %36 = vector.shape_cast %35 : vector<1x128x128xbf16> to vector<128x128xbf16>
    %cst_21 = arith.constant dense<0.000000e+00> : vector<128x128xf32>
    %37 = tpu.matmul %34, %36, %cst_21 {dimension_numbers = #tpu.dot_dimension_numbers<[1], [0], [0], [1], [0, 0, 1, 1], [], []>} : vector<128x128xbf16>, vector<128x128xbf16>, vector<128x128xf32> -> vector<128x128xf32>
    %38 = math.tanh %37 : vector<128x128xf32>
    %39 = arith.truncf %32 : vector<128x4xf32> to vector<128x4xbf16>
    %c0_22 = arith.constant 0 : index
    %c0_23 = arith.constant 0 : index
    %40 = vector.load %arg9[%c0_22, %c0_23] : memref<4x128xbf16, #tpu.memory_space<vmem>>, vector<4x128xbf16>
    %cst_24 = arith.constant dense<0.000000e+00> : vector<128x128xf32>
    %41 = tpu.matmul %39, %40, %cst_24 {dimension_numbers = #tpu.dot_dimension_numbers<[1], [0], [0], [1], [0, 0, 1, 1], [], []>} : vector<128x4xbf16>, vector<4x128xbf16>, vector<128x128xf32> -> vector<128x128xf32>
    %42 = arith.mulf %38, %41 : vector<128x128xf32>
    %43 = arith.truncf %42 : vector<128x128xf32> to vector<128x128xbf16>
    %c0_25 = arith.constant 0 : index
    %c0_26 = arith.constant 0 : index
    %c0_27 = arith.constant 0 : index
    %44 = vector.load %arg8[%c0_25, %c0_26, %c0_27] : memref<2x128x128xbf16, #tpu.memory_space<vmem>>, vector<1x128x128xbf16>
    %45 = vector.shape_cast %44 : vector<1x128x128xbf16> to vector<128x128xbf16>
    %cst_28 = arith.constant dense<0.000000e+00> : vector<128x128xf32>
    %46 = tpu.matmul %43, %45, %cst_28 {dimension_numbers = #tpu.dot_dimension_numbers<[1], [0], [0], [1], [0, 0, 1, 1], [], []>} : vector<128x128xbf16>, vector<128x128xbf16>, vector<128x128xf32> -> vector<128x128xf32>
    %c0_29 = arith.constant 0 : index
    %c0_30 = arith.constant 0 : index
    %c0_31 = arith.constant 0 : index
    %47 = vector.load %arg10[%c0_29, %c0_30, %c0_31] : memref<2x1x128xf32, #tpu.memory_space<vmem>>, vector<1x1x128xf32>
    %48 = vector.shape_cast %47 : vector<1x1x128xf32> to vector<1x128xf32>
    %49 = vector.broadcast %48 : vector<1x128xf32> to vector<128x128xf32>
    %50 = arith.addf %46, %49 : vector<128x128xf32>
    %51 = arith.mulf %1, %50 : vector<128x128xf32>
    %52 = arith.addf %51, %1 : vector<128x128xf32>
    %53 = arith.truncf %52 : vector<128x128xf32> to vector<128x128xbf16>
    %c1 = arith.constant 1 : index
    %c0_32 = arith.constant 0 : index
    %c0_33 = arith.constant 0 : index
    %54 = vector.load %arg6[%c1, %c0_32, %c0_33] : memref<2x128x128xbf16, #tpu.memory_space<vmem>>, vector<1x128x128xbf16>
    %55 = vector.shape_cast %54 : vector<1x128x128xbf16> to vector<128x128xbf16>
    %cst_34 = arith.constant dense<0.000000e+00> : vector<128x128xf32>
    %56 = tpu.matmul %53, %55, %cst_34 {dimension_numbers = #tpu.dot_dimension_numbers<[1], [0], [0], [1], [0, 0, 1, 1], [], []>} : vector<128x128xbf16>, vector<128x128xbf16>, vector<128x128xf32> -> vector<128x128xf32>
    %57 = vector.extract_strided_slice %56 {offsets = [0, 64], sizes = [128, 4], strides = [1, 1]} : vector<128x128xf32> to vector<128x4xf32>
    %cst_35 = arith.constant dense<0xFF800000> : vector<128xf32>
    %58 = vector.multi_reduction <maximumf>, %57, %cst_35 [1] : vector<128x4xf32> to vector<128xf32>
    %59 = vector.shape_cast %58 : vector<128xf32> to vector<128x1xf32>
    %60 = vector.broadcast %59 : vector<128x1xf32> to vector<128x4xf32>
    %61 = arith.subf %57, %60 : vector<128x4xf32>
    %62 = math.exp %61 : vector<128x4xf32>
    %cst_36 = arith.constant dense<0.000000e+00> : vector<128xf32>
    %63 = vector.multi_reduction <add>, %62, %cst_36 [1] : vector<128x4xf32> to vector<128xf32>
    %64 = vector.shape_cast %63 : vector<128xf32> to vector<128x1xf32>
    %65 = tpu.reciprocal %64 {approx = true} : vector<128x1xf32> -> vector<128x1xf32>
    %66 = vector.broadcast %65 : vector<128x1xf32> to vector<128x4xf32>
    %67 = arith.mulf %62, %66 : vector<128x4xf32>
    %68 = math.tanh %56 : vector<128x128xf32>
    %69 = arith.truncf %68 : vector<128x128xf32> to vector<128x128xbf16>
    %c1_37 = arith.constant 1 : index
    %c0_38 = arith.constant 0 : index
    %c0_39 = arith.constant 0 : index
    %70 = vector.load %arg7[%c1_37, %c0_38, %c0_39] : memref<2x128x128xbf16, #tpu.memory_space<vmem>>, vector<1x128x128xbf16>
    %71 = vector.shape_cast %70 : vector<1x128x128xbf16> to vector<128x128xbf16>
    %cst_40 = arith.constant dense<0.000000e+00> : vector<128x128xf32>
    %72 = tpu.matmul %69, %71, %cst_40 {dimension_numbers = #tpu.dot_dimension_numbers<[1], [0], [0], [1], [0, 0, 1, 1], [], []>} : vector<128x128xbf16>, vector<128x128xbf16>, vector<128x128xf32> -> vector<128x128xf32>
    %73 = math.tanh %72 : vector<128x128xf32>
    %74 = arith.truncf %67 : vector<128x4xf32> to vector<128x4xbf16>
    %c0_41 = arith.constant 0 : index
    %c0_42 = arith.constant 0 : index
    %75 = vector.load %arg9[%c0_41, %c0_42] : memref<4x128xbf16, #tpu.memory_space<vmem>>, vector<4x128xbf16>
    %cst_43 = arith.constant dense<0.000000e+00> : vector<128x128xf32>
    %76 = tpu.matmul %74, %75, %cst_43 {dimension_numbers = #tpu.dot_dimension_numbers<[1], [0], [0], [1], [0, 0, 1, 1], [], []>} : vector<128x4xbf16>, vector<4x128xbf16>, vector<128x128xf32> -> vector<128x128xf32>
    %77 = arith.mulf %73, %76 : vector<128x128xf32>
    %78 = arith.truncf %77 : vector<128x128xf32> to vector<128x128xbf16>
    %c1_44 = arith.constant 1 : index
    %c0_45 = arith.constant 0 : index
    %c0_46 = arith.constant 0 : index
    %79 = vector.load %arg8[%c1_44, %c0_45, %c0_46] : memref<2x128x128xbf16, #tpu.memory_space<vmem>>, vector<1x128x128xbf16>
    %80 = vector.shape_cast %79 : vector<1x128x128xbf16> to vector<128x128xbf16>
    %cst_47 = arith.constant dense<0.000000e+00> : vector<128x128xf32>
    %81 = tpu.matmul %78, %80, %cst_47 {dimension_numbers = #tpu.dot_dimension_numbers<[1], [0], [0], [1], [0, 0, 1, 1], [], []>} : vector<128x128xbf16>, vector<128x128xbf16>, vector<128x128xf32> -> vector<128x128xf32>
    %c1_48 = arith.constant 1 : index
    %c0_49 = arith.constant 0 : index
    %c0_50 = arith.constant 0 : index
    %82 = vector.load %arg10[%c1_48, %c0_49, %c0_50] : memref<2x1x128xf32, #tpu.memory_space<vmem>>, vector<1x1x128xf32>
    %83 = vector.shape_cast %82 : vector<1x1x128xf32> to vector<1x128xf32>
    %84 = vector.broadcast %83 : vector<1x128xf32> to vector<128x128xf32>
    %85 = arith.addf %81, %84 : vector<128x128xf32>
    %86 = arith.mulf %1, %85 : vector<128x128xf32>
    %87 = arith.addf %86, %52 : vector<128x128xf32>
    %c0_51 = arith.constant 0 : index
    %c0_52 = arith.constant 0 : index
    %88 = vector.load %arg11[%c0_51, %c0_52] : memref<1x128xf32, #tpu.memory_space<vmem>>, vector<1x128xf32>
    %89 = vector.broadcast %88 : vector<1x128xf32> to vector<128x128xf32>
    %90 = arith.mulf %87, %89 : vector<128x128xf32>
    %cst_53 = arith.constant dense<0.000000e+00> : vector<128xf32>
    %91 = vector.multi_reduction <add>, %90, %cst_53 [1] : vector<128x128xf32> to vector<128xf32>
    %92 = vector.shape_cast %91 : vector<128xf32> to vector<128x1xf32>
    %c0_54 = arith.constant 0 : index
    %c0_55 = arith.constant 0 : index
    %93 = vector.load %arg12[%c0_54, %c0_55] : memref<1x128xf32, #tpu.memory_space<vmem>>, vector<1x128xf32>
    %94 = vector.broadcast %93 : vector<1x128xf32> to vector<128x128xf32>
    %95 = arith.mulf %17, %94 : vector<128x128xf32>
    %cst_56 = arith.constant dense<0.000000e+00> : vector<128xf32>
    %96 = vector.multi_reduction <add>, %95, %cst_56 [1] : vector<128x128xf32> to vector<128xf32>
    %97 = vector.shape_cast %96 : vector<128xf32> to vector<128x1xf32>
    %98 = arith.addf %92, %97 : vector<128x1xf32>
    %c0_57 = arith.constant 0 : index
    %c0_58 = arith.constant 0 : index
    %99 = vector.load %arg13[%c0_57, %c0_58] : memref<1x1xf32, #tpu.memory_space<vmem>>, vector<1x1xf32>
    %100 = vector.broadcast %99 : vector<1x1xf32> to vector<128x1xf32>
    %101 = arith.addf %98, %100 : vector<128x1xf32>
    %102 = arith.negf %101 : vector<128x1xf32>
    %103 = math.exp %102 : vector<128x1xf32>
    %cst_59 = arith.constant 1.000000e+00 : f32
    %104 = vector.broadcast %cst_59 : f32 to vector<128x1xf32>
    %105 = arith.addf %104, %103 : vector<128x1xf32>
    %106 = arith.divf %104, %105 : vector<128x1xf32>
    %c0_60 = arith.constant 0 : index
    %c0_61 = arith.constant 0 : index
    %107 = vector.load %arg14[%c0_60, %c0_61] : memref<128x1xf32, #tpu.memory_space<vmem>>, vector<128x1xf32>
    tpu.vector_store %arg14[%c0_60, %c0_61], %106 {strides = array<i32>} : memref<128x1xf32, #tpu.memory_space<vmem>>, vector<128x1xf32>,
    return
  }
  func.func @transform_0(%arg0: i32) -> (i32, i32) {
    %c0_i32 = arith.constant 0 : i32
    %c0_i32_0 = arith.constant 0 : i32
    return %arg0, %c0_i32 : i32, i32
  }
  func.func @transform_1(%arg0: i32) -> (i32, i32) {
    %c0_i32 = arith.constant 0 : i32
    %c0_i32_0 = arith.constant 0 : i32
    %c0_i32_1 = arith.constant 0 : i32
    return %c0_i32, %c0_i32_0 : i32, i32
  }
  func.func @transform_2(%arg0: i32) -> (i32, i32) {
    %c0_i32 = arith.constant 0 : i32
    %c0_i32_0 = arith.constant 0 : i32
    %c0_i32_1 = arith.constant 0 : i32
    return %c0_i32, %c0_i32_0 : i32, i32
  }
  func.func @transform_3(%arg0: i32) -> (i32, i32) {
    %c0_i32 = arith.constant 0 : i32
    %c0_i32_0 = arith.constant 0 : i32
    %c0_i32_1 = arith.constant 0 : i32
    return %c0_i32, %c0_i32_0 : i32, i32
  }
  func.func @transform_4(%arg0: i32) -> (i32, i32) {
    %c0_i32 = arith.constant 0 : i32
    %c0_i32_0 = arith.constant 0 : i32
    %c0_i32_1 = arith.constant 0 : i32
    return %c0_i32, %c0_i32_0 : i32, i32
  }
  func.func @transform_5(%arg0: i32) -> (i32, i32, i32) {
    %c0_i32 = arith.constant 0 : i32
    %c0_i32_0 = arith.constant 0 : i32
    %c0_i32_1 = arith.constant 0 : i32
    %c0_i32_2 = arith.constant 0 : i32
    return %c0_i32, %c0_i32_0, %c0_i32_1 : i32, i32, i32
  }
  func.func @transform_6(%arg0: i32) -> (i32, i32, i32) {
    %c0_i32 = arith.constant 0 : i32
    %c0_i32_0 = arith.constant 0 : i32
    %c0_i32_1 = arith.constant 0 : i32
    %c0_i32_2 = arith.constant 0 : i32
    return %c0_i32, %c0_i32_0, %c0_i32_1 : i32, i32, i32
  }
  func.func @transform_7(%arg0: i32) -> (i32, i32, i32) {
    %c0_i32 = arith.constant 0 : i32
    %c0_i32_0 = arith.constant 0 : i32
    %c0_i32_1 = arith.constant 0 : i32
    %c0_i32_2 = arith.constant 0 : i32
    return %c0_i32, %c0_i32_0, %c0_i32_1 : i32, i32, i32
  }
  func.func @transform_8(%arg0: i32) -> (i32, i32) {
    %c0_i32 = arith.constant 0 : i32
    %c0_i32_0 = arith.constant 0 : i32
    %c0_i32_1 = arith.constant 0 : i32
    return %c0_i32, %c0_i32_0 : i32, i32
  }
  func.func @transform_9(%arg0: i32) -> (i32, i32, i32) {
    %c0_i32 = arith.constant 0 : i32
    %c0_i32_0 = arith.constant 0 : i32
    %c0_i32_1 = arith.constant 0 : i32
    %c0_i32_2 = arith.constant 0 : i32
    return %c0_i32, %c0_i32_0, %c0_i32_1 : i32, i32, i32
  }
  func.func @transform_10(%arg0: i32) -> (i32, i32) {
    %c0_i32 = arith.constant 0 : i32
    %c0_i32_0 = arith.constant 0 : i32
    %c0_i32_1 = arith.constant 0 : i32
    return %c0_i32, %c0_i32_0 : i32, i32
  }
  func.func @transform_11(%arg0: i32) -> (i32, i32) {
    %c0_i32 = arith.constant 0 : i32
    %c0_i32_0 = arith.constant 0 : i32
    %c0_i32_1 = arith.constant 0 : i32
    return %c0_i32, %c0_i32_0 : i32, i32
  }
  func.func @transform_12(%arg0: i32) -> (i32, i32) {
    %c0_i32 = arith.constant 0 : i32
    %c0_i32_0 = arith.constant 0 : i32
    %c0_i32_1 = arith.constant 0 : i32
    return %c0_i32, %c0_i32_0 : i32, i32
  }
  func.func @transform_13(%arg0: i32) -> (i32, i32) {
    %c0_i32 = arith.constant 0 : i32
    %c0_i32_0 = arith.constant 0 : i32
    return %arg0, %c0_i32 : i32, i32
  }
}

</mosaic_0001>

<bundles_post_ra>
// kernel: dcnv2_forward.1
= control target key start
LH: loop header
LB: loop body
LE: loop exit
PB: predicated region body
PF: predicated region fallthrough
CT: control target
= control target key end

     0   :  { %s4310_s27 = smov 0   ;;  %s5322_s0 = inlined_call_operand.vmem [shape: bf16[256,128], index: 0, kind: input, shape index: {}]   ;;  %s5323_s1 = inlined_call_operand.vmem [shape: bf16[128,128], index: 1, kind: input, shape index: {}]   ;;  %s5324_s2 = inlined_call_operand.vmem [shape: f32[1,128], index: 2, kind: input, shape index: {}]   ;;  %s5325_s3 = inlined_call_operand.vmem [shape: bf16[128,128], index: 3, kind: input, shape index: {}]   ;;  %s5326_s4 = inlined_call_operand.vmem [shape: f32[1,128], index: 4, kind: input, shape index: {}]   ;;  %s5327_s5 = inlined_call_operand.vmem [shape: bf16[2,128,128], index: 5, kind: input, shape index: {}]   ;;  %s5328_s6 = inlined_call_operand.vmem [shape: bf16[2,128,128], index: 6, kind: input, shape index: {}]   ;;  %s5329_s7 = inlined_call_operand.vmem [shape: bf16[2,128,128], index: 7, kind: input, shape index: {}]   ;;  %s5330_s8 = inlined_call_operand.vmem [shape: bf16[4,128], index: 8, kind: input, shape index: {}]   ;;  %s5331_s9 = inlined_call_operand.vmem [shape: f32[2,1,128], index: 9, kind: input, shape index: {}]   ;;  %s5332_s10 = inlined_call_operand.vmem [shape: f32[1,128], index: 10, kind: input, shape index: {}]   ;;  %s5333_s11 = inlined_call_operand.vmem [shape: f32[1,128], index: 11, kind: input, shape index: {}]   ;;  %s5334_s12 = inlined_call_operand.<no memory space> [shape: f32[1,1], index: 12, kind: input, shape index: {}]   ;;  %s5335_s13 = inlined_call_operand.vmem [shape: f32[256,1], index: 13, kind: output, shape index: {}]  }
   0x1   :  { %v18_v0 = vstv %s5334_s12 }
   0x2   :  { %19 = vst [vmem:[#allocation2] sm:$0x1] %v18_v0 }
   0x3 LB: > { %s3198_s28 = sadd.s32 4294967295, %s4234_s27   ;;  %p3202_p0 = scmp.ge.s32.totalorder %s4234_s27, 1  ;;  %s4234_s27 = sphi %s4310_s27, %s25_s27  }
   0x4   : > { %p390_p1 = scmp.lt.s32.totalorder %s4234_s27, 3 }
   0x6   : > { %p391_p2 = pnand %p3202_p0, %p390_p1 }
   0x8   : > { %394 = sbr.rel (%p391_p2) target bundleno = 2606 (0xa2e), region = 72 }
   0xd   : > { %v3818_v1 = vld [vmem:[%s5323_s1 + $0x38] sm:$0xff]   ;;  %s3203_s12 = sshll.u32 %s3198_s28, 4  ;;  %v3819_v2 = vld [vmem:[%s5323_s1 + $0x30] sm:$0xff]   ;;  %v3820_v3 = vld [vmem:[%s5323_s1 + $0x28] sm:$0xff]   ;;  %vm1064_vm0 = vcmask 556544   ;;  %s4236_s22 = smov 64  }
   0xe   : > { %p435_p3 = scmp.lt.s32.totalorder %s3203_s12, 31  ;;  %3515 = vmatprep.subr.bf16.mxu0 %v3818_v1  ;;  %v3821_v4 = vld [vmem:[%s5323_s1 + $0x20] sm:$0xff]   ;;  %v3822_v6 = vld [vmem:[%s5323_s1 + $0x18] sm:$0xff]   ;;  %v3823_v7 = vld [vmem:[%s5323_s1 + $0x10] sm:$0xff]   ;;  %vm1225_vm1 = vcmask 31744   ;;  %vm1564_vm2 = vcmask 1041408  }
   0xf   : > { %3516 = vmatpush3.bf16.msra.mxu0 %v3818_v1  ;;  %v3824_v8 = vld [vmem:[%s5323_s1 + $0x8] sm:$0xff]   ;;  %v3842_v9 = vld [vmem:[%s5325_s3 + $0x38] sm:$0xff]   ;;  %v3843_v10 = vld [vmem:[%s5325_s3 + $0x30] sm:$0xff]   ;;  %vm3125_vm3 = vcmask 7168  }
  0x10   : > { %s5389_s12 = smov (!%p435_p3, %s3203_s12), 31  ;;  %3517 = vmatprep.subr.bf16.mxu0 %v3819_v2  ;;  %3547 = vmatprep.subr.bf16.mxu1 %v3842_v9  ;;  %v3825_v11 = vld [vmem:[%s5323_s1] sm:$0xff]   ;;  %v3844_v12 = vld [vmem:[%s5325_s3 + $0x28] sm:$0xff]   ;;  %v3828_v15 = vld [vmem:[%s5327_s5 + $0x38] sm:$0xff]  }
  0x11   : > { %s3204_s18 = sshll.u32 %s5389_s12, 2  ;;  %3548 = vmatpush3.bf16.msra.mxu1 %v3842_v9  ;;  %v3845_v14 = vld [vmem:[%s5325_s3 + $0x20] sm:$0xff]   ;;  %v3829_v17 = vld [vmem:[%s5327_s5 + $0x30] sm:$0xff]   ;;  %v3846_v18 = vld [vmem:[%s5325_s3 + $0x18] sm:$0xff]   ;;  %s3206_s29 = sshll.u32 %s5389_s12, 3 }
  0x12   : > { %s4333_s21 = scalar_lea.vmem %s5322_s0, %s3204_s18  ;;  %3549 = vmatprep.subr.bf16.mxu1 %v3843_v10  ;;  %v3832_v20 = vld [vmem:[%s5327_s5 + $0x28] sm:$0xff]   ;;  %v3833_v22 = vld [vmem:[%s5327_s5 + $0x20] sm:$0xff]   ;;  %v3836_v24 = vld [vmem:[%s5327_s5 + $0x18] sm:$0xff]   ;;  %s5280_s15 = scalar_lea.vmem %s5335_s13, %s3206_s29 }
  0x13   : > { %3518 = vmatpush3.bf16.msra.mxu0 %v3819_v2  ;;  %v4339_v5 = vld [vmem:[%s4333_s21] sm:$0xff]   ;;  %v449_v13 = vld [vmem:[%s4333_s21 + $0x8] sm:$0xff]   ;;  %v451_v16 = vld [vmem:[%s4333_s21 + $0x10] sm:$0xff]  }
  0x14   : > { %3519 = vmatprep.subr.bf16.mxu0 %v3820_v3  ;;  %3531 = vmatprep.mubr.bf16.mxu0 %v4339_v5  ;;  %v453_v19 = vld [vmem:[%s4333_s21 + $0x18] sm:$0xff]   ;;  %v455_v21 = vld [vmem:[%s4333_s21 + $0x20] sm:$0xff]   ;;  %v457_v23 = vld [vmem:[%s4333_s21 + $0x28] sm:$0xff]  }
  0x15   : > { %3550 = vmatpush3.bf16.msra.mxu1 %v3843_v10  ;;  %v459_v25 = vld [vmem:[%s4333_s21 + $0x30] sm:$0xff]   ;;  %v461_v27 = vld [vmem:[%s4333_s21 + $0x38] sm:$0xff]   ;;  %v3840_v28 = vld [vmem:[%s5327_s5 + $0x8] sm:$0xff]  }
  0x16   : > { %3551 = vmatprep.subr.bf16.mxu1 %v3844_v12  ;;  %v3837_v26 = vld [vmem:[%s5327_s5 + $0x10] sm:$0xff]   ;;  %v3841_v29 = vld [vmem:[%s5327_s5] sm:$0xff]   ;;  %v3848_v31 = vld [vmem:[%s5325_s3 + $0x8] sm:$0xff]  }
  0x17   : > { %3520 = vmatpush3.bf16.msra.mxu0 %v3820_v3  ;;  %v3847_v30 = vld [vmem:[%s5325_s3 + $0x10] sm:$0xff]   ;;  %v3849_v32 = vld [vmem:[%s5325_s3] sm:$0xff]   ;;  %v3850_v33 = vld [vmem:[%s5328_s6 + $0x38] sm:$0xff]  }
  0x18   : > { %3521 = vmatprep.subr.bf16.mxu0 %v3821_v4  ;;  %v4416_v36 = vld [vmem:[%s5324_s2] ss:$0 sm:$0xff]  ;;  %v3851_v52 = vld [vmem:[%s5328_s6 + $0x30] sm:$0xff]   ;;  %v3852_v60 = vld [vmem:[%s5328_s6 + $0x28] sm:$0xff]  }
  0x19   : > { %3552 = vmatpush3.bf16.msra.mxu1 %v3844_v12  ;;  %v3854_v12 = vld [vmem:[%s5328_s6 + $0x18] sm:$0xff]  }
  0x1a   : > { %3553 = vmatprep.subr.bf16.mxu1 %v3845_v14 }
  0x1b   : > { %3522 = vmatpush3.bf16.msra.mxu0 %v3821_v4  ;;  %v3853_v4 = vld [vmem:[%s5328_s6 + $0x20] sm:$0xff]  }
  0x1c   : > { %3523 = vmatprep.subr.bf16.mxu0 %v3822_v6 }
  0x1d   : > { %3554 = vmatpush3.bf16.msra.mxu1 %v3845_v14 }
  0x1e   : > { %3555 = vmatprep.subr.bf16.mxu1 %v3846_v18 }
  0x1f   : > { %3524 = vmatpush3.bf16.msra.mxu0 %v3822_v6 }
  0x20   : > { %3525 = vmatprep.subr.bf16.mxu0 %v3823_v7 }
  0x21   : > { %3556 = vmatpush3.bf16.msra.mxu1 %v3846_v18 }
  0x22   : > { %3557 = vmatprep.subr.bf16.mxu1 %v3847_v30 }
  0x23   : > { %3526 = vmatpush3.bf16.msra.mxu0 %v3823_v7 }
  0x24   : > { %3527 = vmatprep.subr.bf16.mxu0 %v3824_v8 }
  0x25   : > { %3558 = vmatpush3.bf16.msra.mxu1 %v3847_v30 }
  0x26   : > { %3559 = vmatprep.subr.bf16.mxu1 %v3848_v31 }
  0x27   : > { %3528 = vmatpush3.bf16.msra.mxu0 %v3824_v8 }
  0x28   : > { %3529 = vmatprep.subr.bf16.mxu0 %v3825_v11 }
  0x29   : > { %3560 = vmatpush3.bf16.msra.mxu1 %v3848_v31 }
  0x2a   : > { %3561 = vmatprep.subr.bf16.mxu1 %v3849_v32 }
  0x2b   : > { %3530 = vmatpush3.bf16.msra.mxu0 %v3825_v11 }
  0x2c   : > { %3579 = vmatprep.subr.bf16.mxu0 %v3828_v15 }
  0x2d   : > { %3562 = vmatpush3.bf16.msra.mxu1 %v3849_v32 }
  0x2e   : > { %3532 = vmatmul.mubr.bf16.vlgmr.msra.gmra.mxu0 %v449_v13  ;;  %3611 = vmatprep.subr.bf16.mxu1 %v3850_v33 }
  0x2f   : > { %3580 = vmatpush3.bf16.msra.mxu0 %v3828_v15  ;;  %3535 = vmatprep.mubr.bf16.mxu0 %v451_v16 }
  0x30   : > { %3581 = vmatprep.subr.bf16.mxu0 %v3829_v17 }
  0x33   : > { %3582 = vmatpush3.bf16.msra.mxu0 %v3829_v17 }
  0x34   : > { %3583 = vmatprep.subr.bf16.mxu0 %v3832_v20 }
  0x36   : > { %3536 = vmatmul.mubr.bf16.gmra.mxu0 %v453_v19 }
  0x37   : > { %3584 = vmatpush3.bf16.msra.mxu0 %v3832_v20  ;;  %3539 = vmatprep.mubr.bf16.mxu0 %v455_v21  ;;  %v3855_v20 = vld [vmem:[%s5328_s6 + $0x10] sm:$0xff]  }
  0x38   : > { %3585 = vmatprep.subr.bf16.mxu0 %v3833_v22 }
  0x3b   : > { %3586 = vmatpush3.bf16.msra.mxu0 %v3833_v22 }
  0x3c   : > { %3587 = vmatprep.subr.bf16.mxu0 %v3836_v24 }
  0x3e   : > { %3540 = vmatmul.mubr.bf16.gmra.mxu0 %v457_v23 }
  0x3f   : > { %3588 = vmatpush3.bf16.msra.mxu0 %v3836_v24  ;;  %3543 = vmatprep.mubr.bf16.mxu0 %v459_v25 }
  0x40   : > { %3589 = vmatprep.subr.bf16.mxu0 %v3837_v26 }
  0x43   : > { %3590 = vmatpush3.bf16.msra.mxu0 %v3837_v26 }
  0x44   : > { %3591 = vmatprep.subr.bf16.mxu0 %v3840_v28 }
  0x46   : > { %3544 = vmatmul.mubr.bf16.gmra.mxu0 %v461_v27 }
  0x47   : > { %3592 = vmatpush3.bf16.msra.mxu0 %v3840_v28  ;;  %3595 = vmatprep.mubr.bf16.mxu0 %v4339_v5  ;;  %v3856_v28 = vld [vmem:[%s5328_s6 + $0x8] sm:$0xff]  }
  0x48   : > { %3593 = vmatprep.subr.bf16.mxu0 %v3841_v29 }
  0x4b   : > { %3594 = vmatpush3.bf16.msra.mxu0 %v3841_v29 }
  0x4e   : > { %3596 = vmatmul.mubr.bf16.vlgmr.msra.gmra.mxu0 %v449_v13 }
  0x4f   : > { %3599 = vmatprep.mubr.bf16.mxu0 %v451_v16 }
  0x56   : > { %3600 = vmatmul.mubr.bf16.gmra.mxu0 %v453_v19 }
  0x57   : > { %3603 = vmatprep.mubr.bf16.mxu0 %v455_v21 }
  0x5e   : > { %3604 = vmatmul.mubr.bf16.gmra.mxu0 %v457_v23 }
  0x5f   : > { %3607 = vmatprep.mubr.bf16.mxu0 %v459_v25 }
  0x66   : > { %3608 = vmatmul.mubr.bf16.gmra.mxu0 %v461_v27 }
  0xee   : > { %v3533_v34 = vpop.f32.mrf.mxu0 }
  0xef   : > { %v641_v40 = vadd.f32 %v3533_v34, %v4416_v36 }
  0xf0   : > { %v632_v35 = vpop.f32.mrf.mxu0 }
  0xf1   : > { %v633_v38 = vadd.f32 %v4416_v36, %v632_v35  ;;  %v697_v47 = vmax.f32 %v641_v40, 0.0 }
  0xf2   : > { %v3534_v37 = vpop.f32.mrf.mxu0 }
  0xf3   : > { %v644_v39 = vadd.f32 %v3534_v37, %v4416_v36  ;;  %v695_v45 = vmax.f32 %v633_v38, 0.0  ;;  %v3857_v38 = vld [vmem:[%s5328_s6] sm:$0xff]  }
  0xf4   : > { %v635_v41 = vpop.f32.mrf.mxu0 }
  0xf5   : > { %v636_v42 = vadd.f32 %v4416_v36, %v635_v41  ;;  %v698_v43 = vmax.f32 %v644_v39, 0.0 }
  0xf6   : > { %v3537_v44 = vpop.f32.mrf.mxu0 }
  0xf7   : > { %v696_v46 = vmax.f32 %v636_v42, 0.0  ;;  %v712_v50 = vpack.c.bf16 %v698_v43, %v697_v47  ;;  %v657_v55 = vadd.f32 %v3537_v44, %v4416_v36 }
  0xf8   : > { %v648_v48 = vpop.f32.mrf.mxu0 }
  0xf9   : > { %v711_v49 = vpack.c.bf16 %v696_v46, %v695_v45  ;;  %v649_v53 = vadd.f32 %v4416_v36, %v648_v48  ;;  %v701_v63 = vmax.f32 %v657_v55, 0.0 }
  0xfa   : > { %v3538_v51 = vpop.f32.mrf.mxu0 }
  0xfb   : > { %v660_v54 = vadd.f32 %v3538_v51, %v4416_v36  ;;  %3563 = vmatprep.mubr.bf16.mxu1 %v711_v49  ;;  %v699_v61 = vmax.f32 %v649_v53, 0.0 }
  0xfc   : > { %v651_v56 = vpop.f32.mrf.mxu0  ;;  %3564 = vmatmul.mubr.bf16.vlgmr.msra.gmra.mxu1 %v712_v50 }
  0xfd   : > { %v652_v57 = vadd.f32 %v4416_v36, %v651_v56  ;;  %3612 = vmatpush3.bf16.msra.mxu1 %v3850_v33  ;;  %v702_v58 = vmax.f32 %v660_v54, 0.0 }
  0xfe   : > { %v3541_v59 = vpop.f32.mrf.mxu0  ;;  %3613 = vmatprep.subr.bf16.mxu1 %v3851_v52 }
  0xff   : > { %v700_v62 = vmax.f32 %v652_v57, 0.0  ;;  %v714_v2 = vpack.c.bf16 %v702_v58, %v701_v63  ;;  %v673_v7 = vadd.f32 %v3541_v59, %v4416_v36 }
 0x100   : > { %v664_v0 = vpop.f32.mrf.mxu0 }
 0x101   : > { %v713_v1 = vpack.c.bf16 %v700_v62, %v699_v61  ;;  %3614 = vmatpush3.bf16.msra.mxu1 %v3851_v52  ;;  %v665_v5 = vadd.f32 %v4416_v36, %v664_v0  ;;  %v705_v15 = vmax.f32 %v673_v7, 0.0 }
 0x102   : > { %v3542_v3 = vpop.f32.mrf.mxu0  ;;  %3615 = vmatprep.subr.bf16.mxu1 %v3852_v60 }
 0x103   : > { %v676_v6 = vadd.f32 %v3542_v3, %v4416_v36  ;;  %3567 = vmatprep.mubr.bf16.mxu1 %v713_v1  ;;  %v703_v13 = vmax.f32 %v665_v5, 0.0 }
 0x104   : > { %v667_v8 = vpop.f32.mrf.mxu0  ;;  %3568 = vmatmul.mubr.bf16.gmra.mxu1 %v714_v2 }
 0x105   : > { %v668_v9 = vadd.f32 %v4416_v36, %v667_v8  ;;  %3616 = vmatpush3.bf16.msra.mxu1 %v3852_v60  ;;  %v706_v10 = vmax.f32 %v676_v6, 0.0 }
 0x106   : > { %v3545_v11 = vpop.f32.mrf.mxu0  ;;  %3617 = vmatprep.subr.bf16.mxu1 %v3853_v4 }
 0x107   : > { %v704_v14 = vmax.f32 %v668_v9, 0.0  ;;  %v716_v18 = vpack.c.bf16 %v706_v10, %v705_v15  ;;  %v689_v23 = vadd.f32 %v3545_v11, %v4416_v36 }
 0x108   : > { %v680_v16 = vpop.f32.mrf.mxu0 }
 0x109   : > { %v715_v17 = vpack.c.bf16 %v704_v14, %v703_v13  ;;  %3618 = vmatpush3.bf16.msra.mxu1 %v3853_v4  ;;  %v681_v21 = vadd.f32 %v4416_v36, %v680_v16  ;;  %v709_v32 = vmax.f32 %v689_v23, 0.0 }
 0x10a   : > { %v3546_v19 = vpop.f32.mrf.mxu0  ;;  %3619 = vmatprep.subr.bf16.mxu1 %v3854_v12 }
 0x10b   : > { %v692_v22 = vadd.f32 %v3546_v19, %v4416_v36  ;;  %3571 = vmatprep.mubr.bf16.mxu1 %v715_v17  ;;  %v707_v29 = vmax.f32 %v681_v21, 0.0 }
 0x10c   : > { %v683_v24 = vpop.f32.mrf.mxu0  ;;  %3572 = vmatmul.mubr.bf16.gmra.mxu1 %v716_v18 }
 0x10d   : > { %v684_v25 = vadd.f32 %v4416_v36, %v683_v24  ;;  %3620 = vmatpush3.bf16.msra.mxu1 %v3854_v12  ;;  %v710_v26 = vmax.f32 %v692_v22, 0.0 }
 0x10e   : > { %v4449_v27 = vpop.f32.mrf.mxu0  ;;  %3621 = vmatprep.subr.bf16.mxu1 %v3855_v20 }
 0x10f   : > { %v708_v30 = vmax.f32 %v684_v25, 0.0  ;;  %v1071_v31 = vsel %vm1064_vm0, %v4449_v27, -inf  ;;  %v718_v36 = vpack.c.bf16 %v710_v26, %v709_v32 }
 0x110   : > { %1072 = vmax.xlane.f32.xlu1 %v1071_v31  ;;  %v4456_v33 = vpop.f32.mrf.mxu0 }
 0x111   : > { %v717_v34 = vpack.c.bf16 %v708_v30, %v707_v29  ;;  %v1065_v35 = vsel %vm1064_vm0, %v4456_v33, -inf  ;;  %3622 = vmatpush3.bf16.msra.mxu1 %v3855_v20  ;;  %3898 = vtanh.f32 %v4456_v33 }
 0x112   : > { %1066 = vmax.xlane.f32.xlu0 %v1065_v35  ;;  %v4460_v37 = vpop.f32.mrf.mxu0  ;;  %3623 = vmatprep.subr.bf16.mxu1 %v3856_v28 }
 0x113   : > { %3575 = vmatprep.mubr.bf16.mxu1 %v717_v34  ;;  %v1074_v39 = vsel %vm1064_vm0, %v4460_v37, -inf  ;;  %3900 = vtanh.f32 %v4460_v37 }
 0x114   : > { %1075 = vmax.xlane.f32.xlu1 %v1074_v39  ;;  %3576 = vmatmul.mubr.bf16.gmra.mxu1 %v718_v36  ;;  %v4469_v40 = vpop.f32.mrf.mxu0 }
 0x115   : > { %3902 = vtanh.f32 %v4469_v40  ;;  %v1068_v41 = vsel %vm1064_vm0, %v4469_v40, -inf  ;;  %3624 = vmatpush3.bf16.msra.mxu1 %v3856_v28 }
 0x116   : > { %1069 = vmax.xlane.f32.xlu0 %v1068_v41  ;;  %v4474_v42 = vpop.f32.mrf.mxu0  ;;  %3625 = vmatprep.subr.bf16.mxu1 %v3857_v38  ;;  %3904 = vtanh.f32 %v4449_v27 }
 0x117   : > { %3906 = vtanh.f32 %v4474_v42  ;;  %v1083_v47 = vsel %vm1064_vm0, %v4474_v42, -inf }
 0x118   : > { %v4477_v43 = vpop.f32.mrf.mxu0 }
 0x119   : > { %v1077_v44 = vsel %vm1064_vm0, %v4477_v43, -inf  ;;  %3626 = vmatpush3.bf16.msra.mxu1 %v3857_v38  ;;  %3908 = vtanh.f32 %v4477_v43 }
 0x11a   : > { %1078 = vmax.xlane.f32.xlu0 %v1077_v44  ;;  %v4482_v45 = vpop.f32.mrf.mxu0 }
 0x11b   : > { %3910 = vtanh.f32 %v4482_v45  ;;  %v1086_v53 = vsel %vm1064_vm0, %v4482_v45, -inf }
 0x11c   : > { %v4486_v46 = vpop.f32.mrf.mxu0 }
 0x11d   : > { %3912 = vtanh.f32 %v4486_v46  ;;  %v1080_v48 = vsel %vm1064_vm0, %v4486_v46, -inf }
 0x11e   : > { %1084 = vmax.xlane.f32.xlu0 %v1083_v47  ;;  %1081 = vmax.xlane.f32.xlu1 %v1080_v48  ;;  %v4493_v49 = vpop.f32.mrf.mxu0  ;;  %v3899_v50 = vpop.eup %3898 }
 0x11f   : > { %3914 = vtanh.f32 %v4493_v49  ;;  %v1095_v60 = vsel %vm1064_vm0, %v4493_v49, -inf }
 0x120   : > { %v4495_v51 = vpop.f32.mrf.mxu0  ;;  %v3901_v52 = vpop.eup %3900 }
 0x121   : > { %v1089_v54 = vsel %vm1064_vm0, %v4495_v51, -inf  ;;  %3916 = vtanh.f32 %v4495_v51 }
 0x122   : > { %v3903_v55 = vpop.eup %3902  ;;  %1087 = vmax.xlane.f32.xlu1 %v1086_v53  ;;  %1090 = vmax.xlane.f32.xlu0 %v1089_v54  ;;  %v4502_v56 = vpop.f32.mrf.mxu0 }
 0x123   : > { %v1322_v57 = vpack.c.bf16 %v3903_v55, %v3899_v50  ;;  %v3905_v58 = vpop.eup %3904  ;;  %3918 = vtanh.f32 %v4502_v56  ;;  %v1098_v4 = vsel %vm1064_vm0, %v4502_v56, -inf }
 0x124   : > { %v4506_v59 = vpop.f32.mrf.mxu0  ;;  %v1323_v62 = vpack.c.bf16 %v3901_v52, %v3905_v58  ;;  %v3907_v0 = vpop.eup %3906 }
 0x125   : > { %3920 = vtanh.f32 %v4506_v59  ;;  %3627 = vmatprep.mubr.bf16.mxu1 %v1322_v57  ;;  %v1092_v61 = vsel %vm1064_vm0, %v4506_v59, -inf }
 0x126   : > { %1096 = vmax.xlane.f32.xlu0 %v1095_v60  ;;  %1093 = vmax.xlane.f32.xlu1 %v1092_v61  ;;  %v4513_v63 = vpop.f32.mrf.mxu0  ;;  %v3909_v1 = vpop.eup %3908 }
 0x127   : > { %3628 = vmatmul.mubr.bf16.vlgmr.msra.gmra.mxu1 %v1323_v62  ;;  %3922 = vtanh.f32 %v4513_v63  ;;  %v1107_v10 = vsel %vm1064_vm0, %v4513_v63, -inf }
 0x128   : > { %v4515_v2 = vpop.f32.mrf.mxu0  ;;  %v3911_v3 = vpop.eup %3910 }
 0x129   : > { %v1101_v5 = vsel %vm1064_vm0, %v4515_v2, -inf  ;;  %3924 = vtanh.f32 %v4515_v2  ;;  %v1325_v12 = vpack.c.bf16 %v3911_v3, %v3907_v0 }
 0x12a   : > { %v3913_v6 = vpop.eup %3912  ;;  %1099 = vmax.xlane.f32.xlu1 %v1098_v4  ;;  %1102 = vmax.xlane.f32.xlu0 %v1101_v5  ;;  %v4522_v7 = vpop.f32.mrf.mxu0 }
 0x12b   : > { %v1324_v8 = vpack.c.bf16 %v3913_v6, %v3909_v1  ;;  %3926 = vtanh.f32 %v4522_v7  ;;  %v1110_v16 = vsel %vm1064_vm0, %v4522_v7, -inf }
 0x12c   : > { %v4526_v9 = vpop.f32.mrf.mxu0  ;;  %v3915_v13 = vpop.eup %3914 }
 0x12d   : > { %3928 = vtanh.f32 %v4526_v9  ;;  %3631 = vmatprep.mubr.bf16.mxu1 %v1324_v8  ;;  %v1104_v11 = vsel %vm1064_vm0, %v4526_v9, -inf }
 0x12e   : > { %1108 = vmax.xlane.f32.xlu0 %v1107_v10  ;;  %1105 = vmax.xlane.f32.xlu1 %v1104_v11  ;;  %v3917_v14 = vpop.eup %3916 }
 0x12f   : > { %3632 = vmatmul.mubr.bf16.gmra.mxu1 %v1325_v12 }
 0x130   : > { %v3919_v15 = vpop.eup %3918 }
 0x131   : > { %v1327_v19 = vpack.c.bf16 %v3919_v15, %v3915_v13 }
 0x132   : > { %v3921_v17 = vpop.eup %3920  ;;  %1111 = vmax.xlane.f32.xlu1 %v1110_v16 }
 0x133   : > { %v1326_v18 = vpack.c.bf16 %v3921_v17, %v3917_v14 }
 0x134   : > { %v3923_v20 = vpop.eup %3922 }
 0x135   : > { %3635 = vmatprep.mubr.bf16.mxu1 %v1326_v18 }
 0x136   : > { %v3925_v21 = vpop.eup %3924 }
 0x137   : > { %3636 = vmatmul.mubr.bf16.gmra.mxu1 %v1327_v19 }
 0x138   : > { %v3927_v22 = vpop.eup %3926 }
 0x139   : > { %v1329_v25 = vpack.c.bf16 %v3927_v22, %v3923_v20 }
 0x13a   : > { %v3929_v23 = vpop.eup %3928 }
 0x13b   : > { %v1328_v24 = vpack.c.bf16 %v3929_v23, %v3925_v21 }
 0x13d   : > { %3639 = vmatprep.mubr.bf16.mxu1 %v1328_v24 }
 0x13f   : > { %3640 = vmatmul.mubr.bf16.gmra.mxu1 %v1329_v25 }
 0x199   : > { %v1073_v26 = vpop.xlane.xlu1 %1072 }
 0x19a   : > { %v1115_v28 = vsub.f32 %v4449_v27, %v1073_v26 }
 0x19b   : > { %v1067_v29 = vpop.xlane.xlu0 %1066 }
 0x19c   : > { %v1133_v30 = vmul.f32 1.442695, %v1115_v28  ;;  %v1113_v31 = vsub.f32 %v4456_v33, %v1067_v29 }
 0x19d   : > { %v1076_v32 = vpop.xlane.xlu1 %1075 }
 0x19e   : > { %3930 = vpow2.f32 %v1133_v30  ;;  %v1129_v34 = vmul.f32 1.442695, %v1113_v31  ;;  %v1116_v35 = vsub.f32 %v4460_v37, %v1076_v32 }
 0x19f   : > { %v1070_v36 = vpop.xlane.xlu0 %1069 }
 0x1a0   : > { %3932 = vpow2.f32 %v1129_v34  ;;  %v1114_v38 = vsub.f32 %v4469_v40, %v1070_v36  ;;  %v1135_v41 = vmul.f32 1.442695, %v1116_v35 }
 0x1a2   : > { %v1131_v39 = vmul.f32 1.442695, %v1114_v38 }
 0x1a3   : > { %v1079_v44 = vpop.xlane.xlu0 %1078 }
 0x1a4   : > { %3934 = vpow2.f32 %v1131_v39  ;;  %v1117_v47 = vsub.f32 %v4477_v43, %v1079_v44  ;;  %v3224_v44 = vld [vmem:[%s5326_s4] ss:$0 sm:$0xff] }
 0x1a5   : > { %3936 = vpow2.f32 %v1135_v41 }
 0x1a6   : > { %v1137_v27 = vmul.f32 1.442695, %v1117_v47 }
 0x1a7   : > { %v1085_v48 = vpop.xlane.xlu0 %1084  ;;  %v1082_v50 = vpop.xlane.xlu1 %1081 }
 0x1a8   : > { %3938 = vpow2.f32 %v1137_v27  ;;  %v1119_v33 = vsub.f32 %v4474_v42, %v1085_v48  ;;  %v1118_v52 = vsub.f32 %v4486_v46, %v1082_v50 }
 0x1aa   : > { %v1141_v37 = vmul.f32 1.442695, %v1119_v33  ;;  %v1139_v53 = vmul.f32 1.442695, %v1118_v52  ;;  %v3349_v33 = vld [vmem:[%s5333_s11] ss:$0 sm:$0xff] }
 0x1ab   : > { %v4542_v54 = vpop.eup %3930  ;;  %v1088_v40 = vpop.xlane.xlu1 %1087 }
 0x1ac   : > { %v1091_v55 = vpop.xlane.xlu0 %1090  ;;  %3940 = vpow2.f32 %v1141_v37  ;;  %v1120_v57 = vsub.f32 %v4482_v45, %v1088_v40  ;;  %1181 = vrot.lane.b32.xlu1 %v4542_v54, %s4236_s22 }
 0x1ad   : > { %v1121_v43 = vsub.f32 %v4495_v51, %v1091_v55  ;;  %v4548_v58 = vpop.eup %3932  ;;  %3942 = vpow2.f32 %v1139_v53 }
 0x1ae   : > { %v1143_v42 = vmul.f32 1.442695, %v1120_v57  ;;  %1177 = vrot.lane.b32.xlu0 %v4548_v58, %s4236_s22 }
 0x1af   : > { %v1145_v46 = vmul.f32 1.442695, %v1121_v43  ;;  %v1094_v61 = vpop.xlane.xlu1 %1093 }
 0x1b0   : > { %v1097_v60 = vpop.xlane.xlu0 %1096  ;;  %3944 = vpow2.f32 %v1143_v42  ;;  %v1122_v45 = vsub.f32 %v4506_v59, %v1094_v61 }
 0x1b1   : > { %v1123_v62 = vsub.f32 %v4493_v49, %v1097_v60  ;;  %v4554_v51 = vpop.eup %3934  ;;  %3946 = vpow2.f32 %v1145_v46 }
 0x1b2   : > { %v1147_v1 = vmul.f32 1.442695, %v1122_v45  ;;  %1179 = vrot.lane.b32.xlu1 %v4554_v51, %s4236_s22  ;;  %v4558_v5 = vpop.eup %3936 }
 0x1b3   : > { %v1149_v0 = vmul.f32 1.442695, %v1123_v62  ;;  %v1100_v3 = vpop.xlane.xlu1 %1099 }
 0x1b4   : > { %v1103_v4 = vpop.xlane.xlu0 %1102  ;;  %v1124_v6 = vsub.f32 %v4502_v56, %v1100_v3 }
 0x1b5   : > { %3948 = vpow2.f32 %v1149_v0  ;;  %v1125_v8 = vsub.f32 %v4515_v2, %v1103_v4  ;;  %v4562_v49 = vpop.eup %3938 }
 0x1b6   : > { %3950 = vpow2.f32 %v1147_v1  ;;  %v1151_v59 = vmul.f32 1.442695, %v1124_v6  ;;  %1185 = vrot.lane.b32.xlu0 %v4562_v49, %s4236_s22  ;;  %1183 = vrot.lane.b32.xlu1 %v4558_v5, %s4236_s22 }
 0x1b7   : > { %v1153_v10 = vmul.f32 1.442695, %v1125_v8  ;;  %v1106_v12 = vpop.xlane.xlu1 %1105 }
 0x1b8   : > { %v1109_v11 = vpop.xlane.xlu0 %1108  ;;  %3952 = vpow2.f32 %v1151_v59  ;;  %v1126_v56 = vsub.f32 %v4526_v9, %v1106_v12 }
 0x1b9   : > { %v1127_v13 = vsub.f32 %v4513_v63, %v1109_v11  ;;  %v4570_v14 = vpop.eup %3940  ;;  %3954 = vpow2.f32 %v1153_v10 }
 0x1ba   : > { %v4572_v2 = vpop.eup %3942  ;;  %v1155_v16 = vmul.f32 1.442695, %v1126_v56  ;;  %1189 = vrot.lane.b32.xlu0 %v4570_v14, %s4236_s22 }
 0x1bb   : > { %v1157_v15 = vmul.f32 1.442695, %v1127_v13  ;;  %1187 = vrot.lane.b32.xlu1 %v4572_v2, %s4236_s22  ;;  %v1112_v17 = vpop.xlane.xlu1 %1111 }
 0x1bc   : > { %v1128_v18 = vsub.f32 %v4522_v7, %v1112_v17  ;;  %v4579_v63 = vpop.f32.mrf.mxu1 }
 0x1bd   : > { %3956 = vpow2.f32 %v1157_v15  ;;  %v4581_v9 = vpop.eup %3944 }
 0x1be   : > { %3958 = vpow2.f32 %v1155_v16  ;;  %v4583_v19 = vpop.eup %3946  ;;  %v1159_v20 = vmul.f32 1.442695, %v1128_v18  ;;  %v4585_v21 = vpop.f32.mrf.mxu1 }
 0x1bf   : > { %1193 = vrot.lane.b32.xlu0 %v4583_v19, %s4236_s22  ;;  %1191 = vrot.lane.b32.xlu1 %v4581_v9, %s4236_s22 }
 0x1c0   : > { %3960 = vpow2.f32 %v1159_v20  ;;  %v4591_v22 = vpop.f32.mrf.mxu1 }
 0x1c2   : > { %v4593_v7 = vpop.eup %3948  ;;  %v4597_v24 = vpop.f32.mrf.mxu1 }
 0x1c3   : > { %v4595_v23 = vpop.eup %3950  ;;  %1197 = vrot.lane.b32.xlu0 %v4593_v7, %s4236_s22 }
 0x1c4   : > { %1195 = vrot.lane.b32.xlu1 %v4595_v23, %s4236_s22  ;;  %v4603_v25 = vpop.f32.mrf.mxu1 }
 0x1c5   : > { %v4605_v26 = vpop.eup %3952 }
 0x1c6   : > { %v4607_v28 = vpop.eup %3954  ;;  %v4609_v29 = vpop.f32.mrf.mxu1 }
 0x1c7   : > { %1201 = vrot.lane.b32.xlu0 %v4607_v28, %s4236_s22 }
 0x1c8   : > { %1199 = vrot.lane.b32.xlu1 %v4605_v26, %s4236_s22  ;;  %v4615_v30 = vpop.f32.mrf.mxu1 }
 0x1ca   : > { %v4617_v31 = vpop.eup %3956  ;;  %v4621_v34 = vpop.f32.mrf.mxu1 }
 0x1cb   : > { %v4619_v32 = vpop.eup %3958  ;;  %1205 = vrot.lane.b32.xlu0 %v4617_v31, %s4236_s22 }
 0x1cc   : > { %1203 = vrot.lane.b32.xlu1 %v4619_v32, %s4236_s22  ;;  %v4627_v35 = vpop.f32.mrf.mxu1 }
 0x1cd   : > { %v4629_v36 = vpop.eup %3960 }
 0x1ce   : > { %v4631_v38 = vpop.f32.mrf.mxu1 }
 0x1d0   : > { %1207 = vrot.lane.b32.xlu1 %v4629_v36, %s4236_s22  ;;  %v4635_v39 = vpop.f32.mrf.mxu1 }
 0x1d2   : > { %v4637_v41 = vpop.f32.mrf.mxu1 }
 0x1d4   : > { %v3577_v47 = vpop.f32.mrf.mxu1 }
 0x1d5   : > { %v881_v27 = vadd.f32 %v3577_v47, %v3224_v44 }
 0x1d6   : > { %v4642_v48 = vpop.f32.mrf.mxu1 }
 0x1d7   : > { %v901_v50 = vmax.f32 %v881_v27, 0.0 }
 0x1d8   : > { %v3578_v52 = vpop.f32.mrf.mxu1 }
 0x1d9   : > { %v4647_v37 = vmul.f32 %v3349_v33, %v901_v50  ;;  %v884_v53 = vadd.f32 %v3578_v52, %v3224_v44 }
 0x1db   : > { %5352 = vst [vmem:[#allocation3_spill] sm:$0xff] %v4647_v37  ;;  %v902_v40 = vmax.f32 %v884_v53, 0.0 }
 0x1dd   : > { %v4649_v55 = vmul.f32 %v3349_v33, %v902_v40  ;;  %v4670_v40 = vld [vmem:[%s5330_s8] sm:$0x3] }
 0x1de   : > { %3807 = vmatprep.subr.msk.bf16.mxu0 %vm1564_vm2, %v4670_v40 }
 0x1df   : > { %5353 = vst [vmem:[#allocation4_spill] sm:$0xff] %v4649_v55 }
 0x21e   : > { %v1182_v57 = vpop.permute.xlu1 %1181 }
 0x21f   : > { %v1232_v60 = vsel %vm1225_vm1, %v1182_v57, 0.0  ;;  %v4676_v57 = vsel %vm1564_vm2, %v4670_v40, 0 }
 0x220   : > { %v1178_v43 = vpop.permute.xlu0 %1177  ;;  %3644 = vmatpush3.bf16.msra.mxu0 %v4676_v57 }
 0x221   : > { %v1226_v42 = vsel %vm1225_vm1, %v1178_v43, 0.0 }
 0x222   : > { %1227 = vadd.xlane.f32.xlu0 %v1226_v42 }
 0x224   : > { %v1180_v46 = vpop.permute.xlu1 %1179 }
 0x225   : > { %v1229_v61 = vsel %vm1225_vm1, %v1180_v46, 0.0 }
 0x226   : > { %1233 = vadd.xlane.f32.xlu0 %v1232_v60  ;;  %1230 = vadd.xlane.f32.xlu1 %v1229_v61 }
 0x228   : > { %v1186_v62 = vpop.permute.xlu0 %1185  ;;  %v1184_v45 = vpop.permute.xlu1 %1183 }
 0x229   : > { %v1235_v0 = vsel %vm1225_vm1, %v1184_v45, 0.0  ;;  %v1238_v4 = vsel %vm1225_vm1, %v1186_v62, 0.0 }
 0x22a   : > { %1236 = vadd.xlane.f32.xlu0 %v1235_v0 }
 0x22c   : > { %v1190_v1 = vpop.permute.xlu0 %1189 }
 0x22d   : > { %v1188_v3 = vpop.permute.xlu1 %1187  ;;  %v1244_v10 = vsel %vm1225_vm1, %v1190_v1, 0.0 }
 0x22e   : > { %1239 = vadd.xlane.f32.xlu0 %v1238_v4  ;;  %v1241_v6 = vsel %vm1225_vm1, %v1188_v3, 0.0 }
 0x22f   : > { %1242 = vadd.xlane.f32.xlu1 %v1241_v6 }
 0x231   : > { %v1194_v8 = vpop.permute.xlu0 %1193  ;;  %v1192_v59 = vpop.permute.xlu1 %1191 }
 0x232   : > { %1245 = vadd.xlane.f32.xlu0 %v1244_v10  ;;  %v1247_v11 = vsel %vm1225_vm1, %v1192_v59, 0.0  ;;  %v1250_v56 = vsel %vm1225_vm1, %v1194_v8, 0.0 }
 0x233   : > { %1248 = vadd.xlane.f32.xlu1 %v1247_v11 }
 0x235   : > { %v1198_v12 = vpop.permute.xlu0 %1197 }
 0x236   : > { %v1196_v13 = vpop.permute.xlu1 %1195  ;;  %1251 = vadd.xlane.f32.xlu0 %v1250_v56  ;;  %v1256_v18 = vsel %vm1225_vm1, %v1198_v12, 0.0 }
 0x237   : > { %v1253_v15 = vsel %vm1225_vm1, %v1196_v13, 0.0 }
 0x238   : > { %1254 = vadd.xlane.f32.xlu1 %v1253_v15 }
 0x239   : > { %v1202_v16 = vpop.permute.xlu0 %1201 }
 0x23a   : > { %v1200_v17 = vpop.permute.xlu1 %1199  ;;  %1257 = vadd.xlane.f32.xlu0 %v1256_v18  ;;  %v1262_v47 = vsel %vm1225_vm1, %v1202_v16, 0.0 }
 0x23b   : > { %v1259_v20 = vsel %vm1225_vm1, %v1200_v17, 0.0 }
 0x23c   : > { %1260 = vadd.xlane.f32.xlu1 %v1259_v20 }
 0x23d   : > { %v1206_v27 = vpop.permute.xlu0 %1205 }
 0x23e   : > { %v1204_v44 = vpop.permute.xlu1 %1203  ;;  %1263 = vadd.xlane.f32.xlu0 %v1262_v47  ;;  %v1268_v52 = vsel %vm1225_vm1, %v1206_v27, 0.0 }
 0x23f   : > { %v1265_v50 = vsel %vm1225_vm1, %v1204_v44, 0.0 }
 0x240   : > { %1266 = vadd.xlane.f32.xlu1 %v1265_v50 }
 0x242   : > { %v1208_v33 = vpop.permute.xlu1 %1207  ;;  %1269 = vadd.xlane.f32.xlu0 %v1268_v52 }
 0x243   : > { %v1271_v53 = vsel %vm1225_vm1, %v1208_v33, 0.0 }
 0x244   : > { %1272 = vadd.xlane.f32.xlu1 %v1271_v53 }
 0x2ab   : > { %v1228_v43 = vpop.xlane.xlu0 %1227 }
 0x2ac   : > { %3962 = vrcp.f32 %v1228_v43 }
 0x2af   : > { %v1234_v42 = vpop.xlane.xlu0 %1233  ;;  %v1231_v46 = vpop.xlane.xlu1 %1230 }
 0x2b0   : > { %3964 = vrcp.f32 %v1231_v46 }
 0x2b1   : > { %3966 = vrcp.f32 %v1234_v42 }
 0x2b3   : > { %v1237_v60 = vpop.xlane.xlu0 %1236 }
 0x2b4   : > { %3968 = vrcp.f32 %v1237_v60 }
 0x2b7   : > { %v1240_v61 = vpop.xlane.xlu0 %1239 }
 0x2b8   : > { %3970 = vrcp.f32 %v1240_v61  ;;  %v1243_v62 = vpop.xlane.xlu1 %1242 }
 0x2b9   : > { %3972 = vrcp.f32 %v1243_v62  ;;  %v3963_v0 = vpop.eup %3962 }
 0x2ba   : > { %v1290_v8 = vmul.f32 %v3963_v0, %v4548_v58 }
 0x2bb   : > { %v1246_v45 = vpop.xlane.xlu0 %1245 }
 0x2bc   : > { %3974 = vrcp.f32 %v1246_v45  ;;  %v1249_v1 = vpop.xlane.xlu1 %1248  ;;  %v3859_v45 = vld [vmem:[%s5329_s7 + $0x30] sm:$0xff]  }
 0x2bd   : > { %3976 = vrcp.f32 %v1249_v1  ;;  %v3965_v3 = vpop.eup %3964 }
 0x2be   : > { %v3967_v4 = vpop.eup %3966  ;;  %v1291_v59 = vmul.f32 %v3965_v3, %v4554_v51 }
 0x2bf   : > { %v1252_v6 = vpop.xlane.xlu0 %1251  ;;  %v1292_v13 = vmul.f32 %v3967_v4, %v4542_v54 }
 0x2c0   : > { %3978 = vrcp.f32 %v1252_v6  ;;  %v1507_v12 = vpack.c.bf16 %v1291_v59, %v1290_v8 }
 0x2c1   : > { %v1255_v10 = vpop.xlane.xlu1 %1254  ;;  %v3969_v11 = vpop.eup %3968 }
 0x2c2   : > { %3980 = vrcp.f32 %v1255_v10  ;;  %v1293_v56 = vmul.f32 %v3969_v11, %v4558_v5  ;;  %1524 = vrot.lane.b32.xlu0 %v1507_v12, %s4236_s22 }
 0x2c3   : > { %v1258_v15 = vpop.xlane.xlu0 %1257 }
 0x2c4   : > { %3982 = vrcp.f32 %v1258_v15  ;;  %v1508_v17 = vpack.c.bf16 %v1293_v56, %v1292_v13 }
 0x2c5   : > { %v1261_v16 = vpop.xlane.xlu1 %1260  ;;  %v3971_v18 = vpop.eup %3970 }
 0x2c6   : > { %3984 = vrcp.f32 %v1261_v16  ;;  %v3973_v58 = vpop.eup %3972  ;;  %1526 = vrot.lane.b32.xlu1 %v1508_v17, %s4236_s22  ;;  %v1294_v51 = vmul.f32 %v3971_v18, %v4562_v49  ;;  %v3863_v18 = vld [vmem:[%s5329_s7 + $0x10] sm:$0xff]  }
 0x2c7   : > { %v1264_v20 = vpop.xlane.xlu0 %1263  ;;  %v1295_v44 = vmul.f32 %v3973_v58, %v4572_v2  ;;  %v3864_v58 = vld [vmem:[%s5329_s7 + $0x8] sm:$0xff]  }
 0x2c8   : > { %3986 = vrcp.f32 %v1264_v20  ;;  %v3866_v20 = vld [vmem:[%s5327_s5 + $0x78] sm:$0xff]  }
 0x2c9   : > { %v1267_v54 = vpop.xlane.xlu1 %1266  ;;  %v3975_v47 = vpop.eup %3974  ;;  %v1509_v5 = vpack.c.bf16 %v1295_v44, %v1294_v51  ;;  %v3865_v51 = vld [vmem:[%s5329_s7] sm:$0xff]   ;;  %v3867_v44 = vld [vmem:[%s5327_s5 + $0x70] sm:$0xff]   ;;  %3693 = vmatprep.subr.bf16.mxu0 %v3866_v20 }
 0x2ca   : > { %3988 = vrcp.f32 %v1267_v54  ;;  %v3977_v27 = vpop.eup %3976  ;;  %v1296_v50 = vmul.f32 %v3975_v47, %v4570_v14  ;;  %v3868_v54 = vld [vmem:[%s5327_s5 + $0x68] sm:$0xff]   ;;  %v3869_v47 = vld [vmem:[%s5327_s5 + $0x60] sm:$0xff]  }
 0x2cb   : > { %1528 = vrot.lane.b32.xlu1 %v1509_v5, %s4236_s22  ;;  %v1270_v33 = vpop.xlane.xlu0 %1269  ;;  %v1297_v52 = vmul.f32 %v3977_v27, %v4581_v9  ;;  %v3858_v9 = vld [vmem:[%s5329_s7 + $0x38] sm:$0xff]   ;;  %v4747_v5 = vpop.f32.mrf.mxu1 }
 0x2cc   : > { %3990 = vrcp.f32 %v1270_v33  ;;  %3661 = vmatprep.subr.bf16.mxu1 %v3858_v9 }
 0x2cd   : > { %v1273_v53 = vpop.xlane.xlu1 %1272  ;;  %v3979_v43 = vpop.eup %3978  ;;  %v1510_v49 = vpack.c.bf16 %v1297_v52, %v1296_v50  ;;  %3662 = vmatpush3.bf16.msra.mxu1 %v3858_v9 }
 0x2ce   : > { %3992 = vrcp.f32 %v1273_v53  ;;  %v1298_v2 = vmul.f32 %v3979_v43, %v4583_v19  ;;  %3663 = vmatprep.subr.bf16.mxu1 %v3859_v45  ;;  %v3629_v27 = vpop.f32.mrf.mxu1 }
 0x2cf   : > { %v3981_v42 = vpop.eup %3980  ;;  %1530 = vrot.lane.b32.xlu1 %v1510_v49, %s4236_s22 }
 0x2d0   : > { %v1299_v46 = vmul.f32 %v3981_v42, %v4595_v23  ;;  %v1428_v50 = vpop.f32.mrf.mxu1 }
 0x2d1   : > { %v3983_v60 = vpop.eup %3982  ;;  %3664 = vmatpush3.bf16.msra.mxu1 %v3859_v45  ;;  %3994 = vtanh.f32 %v1428_v50 }
 0x2d2   : > { %v1511_v61 = vpack.c.bf16 %v1299_v46, %v1298_v2  ;;  %v1300_v62 = vmul.f32 %v3983_v60, %v4593_v7  ;;  %v3860_v7 = vld [vmem:[%s5329_s7 + $0x28] sm:$0xff]   ;;  %v3630_v33 = vpop.f32.mrf.mxu1 }
 0x2d3   : > { %v3985_v14 = vpop.eup %3984  ;;  %3665 = vmatprep.subr.bf16.mxu1 %v3860_v7  ;;  %3996 = vtanh.f32 %v3630_v33 }
 0x2d4   : > { %1532 = vrot.lane.b32.xlu0 %v1511_v61, %s4236_s22  ;;  %v1301_v19 = vmul.f32 %v3985_v14, %v4605_v26  ;;  %v1431_v52 = vpop.f32.mrf.mxu1 }
 0x2d5   : > { %v3987_v0 = vpop.eup %3986  ;;  %3666 = vmatpush3.bf16.msra.mxu1 %v3860_v7  ;;  %3998 = vtanh.f32 %v1431_v52 }
 0x2d6   : > { %v1512_v23 = vpack.c.bf16 %v1301_v19, %v1300_v62  ;;  %v1302_v3 = vmul.f32 %v3987_v0, %v4607_v28  ;;  %v3861_v28 = vld [vmem:[%s5329_s7 + $0x20] sm:$0xff]   ;;  %v3633_v53 = vpop.f32.mrf.mxu1  ;;  %4000 = vtanh.f32 %v3629_v27 }
 0x2d7   : > { %v3989_v1 = vpop.eup %3988  ;;  %3667 = vmatprep.subr.bf16.mxu1 %v3861_v28 }
 0x2d8   : > { %1534 = vrot.lane.b32.xlu1 %v1512_v23, %s4236_s22  ;;  %v1303_v4 = vmul.f32 %v3989_v1, %v4619_v32  ;;  %v3862_v32 = vld [vmem:[%s5329_s7 + $0x18] sm:$0xff]   ;;  %v1444_v43 = vpop.f32.mrf.mxu1 }
 0x2d9   : > { %v3991_v6 = vpop.eup %3990  ;;  %3668 = vmatpush3.bf16.msra.mxu1 %v3861_v28  ;;  %4002 = vtanh.f32 %v1444_v43 }
 0x2da   : > { %v1513_v8 = vpack.c.bf16 %v1303_v4, %v1302_v3  ;;  %v1304_v59 = vmul.f32 %v3991_v6, %v4617_v31  ;;  %3669 = vmatprep.subr.bf16.mxu1 %v3862_v32  ;;  %v3634_v49 = vpop.f32.mrf.mxu1 }
 0x2db   : > { %v3993_v26 = vpop.eup %3992  ;;  %4004 = vtanh.f32 %v3634_v49 }
 0x2dc   : > { %1536 = vrot.lane.b32.xlu0 %v1513_v8, %s4236_s22  ;;  %v1305_v10 = vmul.f32 %v3993_v26, %v4629_v36  ;;  %v1447_v42 = vpop.f32.mrf.mxu1 }
 0x2dd   : > { %3670 = vmatpush3.bf16.msra.mxu1 %v3862_v32  ;;  %4006 = vtanh.f32 %v1447_v42 }
 0x2de   : > { %v1514_v11 = vpack.c.bf16 %v1305_v10, %v1304_v59  ;;  %3671 = vmatprep.subr.bf16.mxu1 %v3863_v18  ;;  %v3637_v2 = vpop.f32.mrf.mxu1  ;;  %4008 = vtanh.f32 %v3633_v53  ;;  %v3995_v45 = vpop.eup %3994 }
 0x2e0   : > { %1538 = vrot.lane.b32.xlu1 %v1514_v11, %s4236_s22  ;;  %v1460_v46 = vpop.f32.mrf.mxu1  ;;  %v3997_v0 = vpop.eup %3996 }
 0x2e1   : > { %3672 = vmatpush3.bf16.msra.mxu1 %v3863_v18  ;;  %4010 = vtanh.f32 %v1460_v46 }
 0x2e2   : > { %3673 = vmatprep.subr.bf16.mxu1 %v3864_v58  ;;  %v3638_v60 = vpop.f32.mrf.mxu1  ;;  %v3999_v23 = vpop.eup %3998 }
 0x2e3   : > { %v4001_v7 = vpop.eup %4000  ;;  %4012 = vtanh.f32 %v3638_v60 }
 0x2e4   : > { %v1463_v61 = vpop.f32.mrf.mxu1 }
 0x2e5   : > { %3674 = vmatpush3.bf16.msra.mxu1 %v3864_v58  ;;  %4014 = vtanh.f32 %v1463_v61 }
 0x2e6   : > { %3675 = vmatprep.subr.bf16.mxu1 %v3865_v51  ;;  %v3641_v9 = vpop.f32.mrf.mxu1  ;;  %4016 = vtanh.f32 %v3637_v2 }
 0x2e8   : > { %v1476_v4 = vpop.f32.mrf.mxu1 }
 0x2e9   : > { %3676 = vmatpush3.bf16.msra.mxu1 %v3865_v51  ;;  %4018 = vtanh.f32 %v1476_v4 }
 0x2ea   : > { %v3642_v11 = vpop.f32.mrf.mxu1 }
 0x2eb   : > { %4020 = vtanh.f32 %v3642_v11  ;;  %v3873_v11 = vld [vmem:[%s5327_s5 + $0x40] sm:$0xff]  }
 0x334   : > { %v1525_v31 = vpop.permute.xlu0 %1524 }
 0x335   : > { %3645 = vmatprep.mubr.msk.bf16.mxu0 %vm1225_vm1, %v1525_v31  ;;  %v4003_v31 = vpop.eup %4002 }
 0x338   : > { %v1527_v12 = vpop.permute.xlu1 %1526 }
 0x339   : > { %3646 = vmatmul.mubr.msk.bf16.vlgmr.msra.gmra.mxu0 %vm1225_vm1, %v1527_v12 }
 0x33a   : > { %3694 = vmatpush3.bf16.msra.mxu0 %v3866_v20 }
 0x33b   : > { %3695 = vmatprep.subr.bf16.mxu0 %v3867_v44 }
 0x33d   : > { %v1529_v13 = vpop.permute.xlu1 %1528 }
 0x33e   : > { %3649 = vmatprep.mubr.msk.bf16.mxu0 %vm1225_vm1, %v1529_v13  ;;  %3696 = vmatpush3.bf16.msra.mxu0 %v3867_v44  ;;  %v4005_v13 = vpop.eup %4004 }
 0x33f   : > { %3697 = vmatprep.subr.bf16.mxu0 %v3868_v54 }
 0x341   : > { %v1531_v36 = vpop.permute.xlu1 %1530 }
 0x342   : > { %3650 = vmatmul.mubr.msk.bf16.gmra.mxu0 %vm1225_vm1, %v1531_v36  ;;  %v4007_v36 = vpop.eup %4006 }
 0x343   : > { %3698 = vmatpush3.bf16.msra.mxu0 %v3868_v54 }
 0x344   : > { %3699 = vmatprep.subr.bf16.mxu0 %v3869_v47 }
 0x346   : > { %v1533_v56 = vpop.permute.xlu0 %1532 }
 0x347   : > { %3653 = vmatprep.mubr.msk.bf16.mxu0 %vm1225_vm1, %v1533_v56  ;;  %3700 = vmatpush3.bf16.msra.mxu0 %v3869_v47  ;;  %v1479_v56 = vpop.f32.mrf.mxu1 }
 0x348   : > { %4022 = vtanh.f32 %v1479_v56 }
 0x349   : > { %4024 = vtanh.f32 %v3641_v9 }
 0x34a   : > { %v1535_v15 = vpop.permute.xlu1 %1534 }
 0x34b   : > { %3654 = vmatmul.mubr.msk.bf16.gmra.mxu0 %vm1225_vm1, %v1535_v15 }
 0x34e   : > { %v1537_v16 = vpop.permute.xlu0 %1536 }
 0x34f   : > { %3657 = vmatprep.mubr.msk.bf16.mxu0 %vm1225_vm1, %v1537_v16 }
 0x352   : > { %v1539_v17 = vpop.permute.xlu1 %1538 }
 0x353   : > { %3658 = vmatmul.mubr.msk.bf16.gmra.mxu0 %vm1225_vm1, %v1539_v17  ;;  %v4009_v17 = vpop.eup %4008 }
 0x354   : > { %v4011_v27 = vpop.eup %4010 }
 0x355   : > { %v4013_v33 = vpop.eup %4012 }
 0x356   : > { %v4015_v52 = vpop.eup %4014 }
 0x357   : > { %v4017_v49 = vpop.eup %4016 }
 0x358   : > { %v4019_v9 = vpop.eup %4018 }
 0x3f9   : > { %v3647_v14 = vpop.f32.mrf.mxu0 }
 0x3fa   : > { %v1667_v26 = vmul.f32 %v4001_v7, %v3647_v14 }
 0x3fb   : > { %v1602_v62 = vpop.f32.mrf.mxu0 }
 0x3fc   : > { %v1665_v6 = vmul.f32 %v3995_v45, %v1602_v62 }
 0x3fd   : > { %v3648_v19 = vpop.f32.mrf.mxu0 }
 0x3fe   : > { %v1668_v1 = vmul.f32 %v3997_v0, %v3648_v19  ;;  %v4021_v19 = vpop.eup %4020 }
 0x3ff   : > { %v1605_v3 = vpop.f32.mrf.mxu0  ;;  %v4023_v0 = vpop.eup %4022 }
 0x400   : > { %v1666_v8 = vmul.f32 %v3999_v23, %v1605_v3  ;;  %v1682_v10 = vpack.c.bf16 %v1668_v1, %v1667_v26  ;;  %v4025_v3 = vpop.eup %4024 }
 0x402   : > { %v1681_v59 = vpack.c.bf16 %v1666_v8, %v1665_v6  ;;  %v3651_v28 = vpop.f32.mrf.mxu0 }
 0x403   : > { %v1671_v51 = vmul.f32 %v4009_v17, %v3651_v28  ;;  %v3871_v28 = vld [vmem:[%s5327_s5 + $0x50] sm:$0xff]  }
 0x404   : > { %v1618_v32 = vpop.f32.mrf.mxu0  ;;  %3677 = vmatprep.mubr.bf16.mxu1 %v1681_v59  ;;  %v3870_v59 = vld [vmem:[%s5327_s5 + $0x58] sm:$0xff]  }
 0x405   : > { %3678 = vmatmul.mubr.bf16.vlgmr.msra.gmra.mxu1 %v1682_v10  ;;  %v1669_v18 = vmul.f32 %v4003_v31, %v1618_v32  ;;  %3701 = vmatprep.subr.bf16.mxu0 %v3870_v59  ;;  %v3872_v10 = vld [vmem:[%s5327_s5 + $0x48] sm:$0xff]   ;;  %v3874_v32 = vld [vmem:[%s5328_s6 + $0x78] sm:$0xff]   ;;  %v3875_v31 = vld [vmem:[%s5328_s6 + $0x70] sm:$0xff]  }
 0x406   : > { %v3652_v12 = vpop.f32.mrf.mxu0  ;;  %3702 = vmatpush3.bf16.msra.mxu0 %v3870_v59  ;;  %3725 = vmatprep.subr.bf16.mxu1 %v3874_v32 }
 0x407   : > { %v1672_v15 = vmul.f32 %v4005_v13, %v3652_v12  ;;  %3703 = vmatprep.subr.bf16.mxu0 %v3871_v28  ;;  %3726 = vmatpush3.bf16.msra.mxu1 %v3874_v32  ;;  %v4772_v13 = vld [vmem:[%s5331_s9] ss:$0 sm:$0xff] }
 0x408   : > { %v1621_v16 = vpop.f32.mrf.mxu0  ;;  %3727 = vmatprep.subr.bf16.mxu1 %v3875_v31 }
 0x409   : > { %v1670_v58 = vmul.f32 %v4007_v36, %v1621_v16  ;;  %v1684_v54 = vpack.c.bf16 %v1672_v15, %v1671_v51  ;;  %v4219_v15 = vld [vmem:[%s4333_s21 + $0x8] sm:$0xff]  }
 0x40a   : > { %3704 = vmatpush3.bf16.msra.mxu0 %v3871_v28  ;;  %v4778_v16 = vunpack.c.h.bf16 %v4219_v15 }
 0x40b   : > { %v3655_v20 = vpop.f32.mrf.mxu0  ;;  %v1683_v44 = vpack.c.bf16 %v1670_v58, %v1669_v18  ;;  %3705 = vmatprep.subr.bf16.mxu0 %v3872_v10  ;;  %3728 = vmatpush3.bf16.msra.mxu1 %v3875_v31  ;;  %v4781_v18 = vunpack.c.l.bf16 %v4219_v15 }
 0x40c   : > { %v1675_v46 = vmul.f32 %v4017_v49, %v3655_v20 }
 0x40d   : > { %v1634_v47 = vpop.f32.mrf.mxu0  ;;  %3681 = vmatprep.mubr.bf16.mxu1 %v1683_v44 }
 0x40e   : > { %3682 = vmatmul.mubr.bf16.gmra.mxu1 %v1684_v54  ;;  %v1673_v42 = vmul.f32 %v4011_v27, %v1634_v47  ;;  %3706 = vmatpush3.bf16.msra.mxu0 %v3872_v10 }
 0x40f   : > { %v3656_v50 = vpop.f32.mrf.mxu0  ;;  %3707 = vmatprep.subr.bf16.mxu0 %v3873_v11 }
 0x410   : > { %v1676_v53 = vmul.f32 %v4013_v33, %v3656_v50 }
 0x411   : > { %v1637_v43 = vpop.f32.mrf.mxu0 }
 0x412   : > { %v1674_v2 = vmul.f32 %v4015_v52, %v1637_v43  ;;  %v1686_v14 = vpack.c.bf16 %v1676_v53, %v1675_v46  ;;  %3708 = vmatpush3.bf16.msra.mxu0 %v3873_v11  ;;  %v4220_v46 = vld [vmem:[%s4333_s21 + $0x10] sm:$0xff]   ;;  %v4222_v11 = vld [vmem:[%s4333_s21 + $0x20] sm:$0xff]  }
 0x413   : > { %v3659_v60 = vpop.f32.mrf.mxu0  ;;  %3808 = vmatprep.subr.msk.bf16.mxu0 %vm1564_vm2, %v4670_v40  ;;  %v4218_v40 = vld [vmem:[%s4333_s21] sm:$0xff]   ;;  %v4828_v32 = vunpack.c.l.bf16 %v4222_v11 }
 0x414   : > { %v1685_v61 = vpack.c.bf16 %v1674_v2, %v1673_v42  ;;  %v1679_v6 = vmul.f32 %v4025_v3, %v3659_v60  ;;  %v4775_v56 = vunpack.c.l.bf16 %v4218_v40  ;;  %v4784_v20 = vunpack.c.h.bf16 %v4218_v40 }
 0x415   : > { %v1650_v62 = vpop.f32.mrf.mxu0  ;;  %v4802_v60 = vunpack.c.l.bf16 %v4220_v46  ;;  %5354 = vst [vmem:[#allocation5_spill] sm:$0xff] %v4828_v32 }
 0x416   : > { %3685 = vmatprep.mubr.bf16.mxu1 %v1685_v61  ;;  %v1677_v7 = vmul.f32 %v4019_v9, %v1650_v62  ;;  %v4221_v61 = vld [vmem:[%s4333_s21 + $0x18] sm:$0xff]  }
 0x417   : > { %v3660_v45 = vpop.f32.mrf.mxu0  ;;  %3686 = vmatmul.mubr.bf16.gmra.mxu1 %v1686_v14  ;;  %v4805_v14 = vunpack.c.h.bf16 %v4221_v61 }
 0x418   : > { %v1680_v23 = vmul.f32 %v4021_v19, %v3660_v45  ;;  %v4811_v45 = vunpack.c.l.bf16 %v4221_v61 }
 0x419   : > { %v1653_v1 = vpop.f32.mrf.mxu0 }
 0x41a   : > { %v1678_v4 = vmul.f32 %v4023_v0, %v1653_v1  ;;  %v1688_v26 = vpack.c.bf16 %v1680_v23, %v1679_v6  ;;  %v4816_v1 = vunpack.c.h.bf16 %v4220_v46 }
 0x41c   : > { %v1687_v8 = vpack.c.bf16 %v1678_v4, %v1677_v7 }
 0x41e   : > { %3689 = vmatprep.mubr.bf16.mxu1 %v1687_v8 }
 0x41f   : > { %3690 = vmatmul.mubr.bf16.gmra.mxu1 %v1688_v26 }
 0x4c5   : > { %v3679_v12 = vpop.f32.mrf.mxu1 }
 0x4c6   : > { %v1803_v58 = vadd.f32 %v3679_v12, %v4772_v13 }
 0x4c7   : > { %v1794_v36 = vpop.f32.mrf.mxu1 }
 0x4c8   : > { %v1795_v17 = vadd.f32 %v4772_v13, %v1794_v36  ;;  %v1859_v33 = vmul.f32 %v1803_v58, %v4781_v18  ;;  %v4223_v36 = vld [vmem:[%s4333_s21 + $0x28] sm:$0xff]  }
 0x4c9   : > { %v3680_v51 = vpop.f32.mrf.mxu1  ;;  %v4834_v40 = vunpack.c.h.bf16 %v4223_v36  ;;  %v4843_v58 = vunpack.c.l.bf16 %v4223_v36 }
 0x4ca   : > { %v1806_v44 = vadd.f32 %v3680_v51, %v4772_v13  ;;  %v1857_v47 = vmul.f32 %v1795_v17, %v4775_v56  ;;  %v4808_v62 = vadd.f32 %v1859_v33, %v4781_v18 }
 0x4cb   : > { %v1797_v54 = vpop.f32.mrf.mxu1  ;;  %5355 = vst [vmem:[#allocation6_spill] sm:$0xff] %v4834_v40  ;;  %5356 = vst [vmem:[#allocation7_spill] sm:$0xff] %v4843_v58 }
 0x4cc   : > { %v1860_v27 = vmul.f32 %v1806_v44, %v4778_v16  ;;  %v1798_v50 = vadd.f32 %v4772_v13, %v1797_v54  ;;  %v4796_v49 = vadd.f32 %v1857_v47, %v4775_v56  ;;  %v4849_v47 = vunpack.c.h.bf16 %v4222_v11 }
 0x4ce   : > { %v1858_v52 = vmul.f32 %v1798_v50, %v4784_v20  ;;  %v3683_v53 = vpop.f32.mrf.mxu1  ;;  %v4793_v43 = vadd.f32 %v1860_v27, %v4778_v16  ;;  %5357 = vst [vmem:[#allocation8_spill] sm:$0xff] %v4849_v47 }
 0x4cf   : > { %v1819_v19 = vadd.f32 %v3683_v53, %v4772_v13 }
 0x4d0   : > { %v4799_v42 = vadd.f32 %v1858_v52, %v4784_v20  ;;  %v1810_v2 = vpop.f32.mrf.mxu1  ;;  %v1890_v3 = vpack.c.bf16 %v4793_v43, %v4808_v62 }
 0x4d1   : > { %v1811_v9 = vadd.f32 %v4772_v13, %v1810_v2  ;;  %v1863_v59 = vmul.f32 %v1819_v19, %v4811_v45 }
 0x4d2   : > { %v3684_v0 = vpop.f32.mrf.mxu1  ;;  %v1889_v23 = vpack.c.bf16 %v4799_v42, %v4796_v49 }
 0x4d3   : > { %v1822_v7 = vadd.f32 %v3684_v0, %v4772_v13  ;;  %v1861_v6 = vmul.f32 %v1811_v9, %v4802_v60  ;;  %v4846_v51 = vadd.f32 %v1863_v59, %v4811_v45  ;;  %v4224_v0 = vld [vmem:[%s4333_s21 + $0x30] sm:$0xff]  }
 0x4d4   : > { %v1813_v4 = vpop.f32.mrf.mxu1  ;;  %3709 = vmatprep.mubr.bf16.mxu0 %v1889_v23  ;;  %v4862_v23 = vunpack.c.l.bf16 %v4224_v0  ;;  %v4883_v36 = vunpack.c.h.bf16 %v4224_v0 }
 0x4d5   : > { %v1864_v8 = vmul.f32 %v1822_v7, %v4805_v14  ;;  %v1814_v26 = vadd.f32 %v4772_v13, %v1813_v4  ;;  %3710 = vmatmul.mubr.bf16.vlgmr.msra.gmra.mxu0 %v1890_v3  ;;  %v4837_v15 = vadd.f32 %v1861_v6, %v4802_v60  ;;  %v4225_v4 = vld [vmem:[%s4333_s21 + $0x38] sm:$0xff]  }
 0x4d6   : > { %3758 = vmatpush3.bf16.msra.mxu0 %v4676_v57  ;;  %5358 = vst [vmem:[#allocation9_spill] sm:$0xff] %v4862_v23  ;;  %v4868_v6 = vunpack.c.h.bf16 %v4225_v4  ;;  %5365 = vst [vmem:[#allocation16_spill] sm:$0xff] %v4883_v36 }
 0x4d7   : > { %v3687_v28 = vpop.f32.mrf.mxu1  ;;  %v1862_v10 = vmul.f32 %v1814_v26, %v4816_v1  ;;  %v4831_v31 = vadd.f32 %v1864_v8, %v4805_v14 }
 0x4d8   : > { %v1835_v44 = vadd.f32 %v3687_v28, %v4772_v13  ;;  %5360 = vst [vmem:[#allocation11_spill] sm:$0xff] %v4868_v6  ;;  %v4877_v28 = vunpack.c.l.bf16 %v4225_v4  ;;  %v3877_v4 = vld [vmem:[%s5328_s6 + $0x60] sm:$0xff]  }
 0x4d9   : > { %v1826_v12 = vpop.f32.mrf.mxu1  ;;  %v4840_v17 = vadd.f32 %v1862_v10, %v4816_v1  ;;  %v1892_v52 = vpack.c.bf16 %v4831_v31, %v4846_v51 }
 0x4da   : > { %v1827_v57 = vadd.f32 %v4772_v13, %v1826_v12  ;;  %v1867_v61 = vmul.f32 %v1835_v44, %v4843_v58  ;;  %5363 = vst [vmem:[#allocation14_spill] sm:$0xff] %v4877_v28 }
 0x4db   : > { %v3688_v54 = vpop.f32.mrf.mxu1  ;;  %v1891_v50 = vpack.c.bf16 %v4840_v17, %v4837_v15 }
 0x4dc   : > { %v1838_v27 = vadd.f32 %v3688_v54, %v4772_v13  ;;  %v1865_v53 = vmul.f32 %v1827_v57, %v4828_v32  ;;  %v4880_v10 = vadd.f32 %v1867_v61, %v4843_v58 }
 0x4dd   : > { %v1829_v33 = vpop.f32.mrf.mxu1  ;;  %3713 = vmatprep.mubr.bf16.mxu0 %v1891_v50 }
 0x4de   : > { %v1868_v2 = vmul.f32 %v1838_v27, %v4834_v40  ;;  %v1830_v46 = vadd.f32 %v4772_v13, %v1829_v33  ;;  %3714 = vmatmul.mubr.bf16.gmra.mxu0 %v1892_v52  ;;  %v4871_v8 = vadd.f32 %v1865_v53, %v4828_v32  ;;  %5364 = vst [vmem:[#allocation15_spill] sm:$0xff] %v4880_v10 }
 0x4df   : > { %v3691_v9 = vpop.f32.mrf.mxu1 }
 0x4e0   : > { %v1866_v19 = vmul.f32 %v1830_v46, %v4849_v47  ;;  %v4865_v3 = vadd.f32 %v1868_v2, %v4834_v40  ;;  %5361 = vst [vmem:[#allocation12_spill] sm:$0xff] %v4871_v8  ;;  %v1851_v11 = vadd.f32 %v3691_v9, %v4772_v13 }
 0x4e1   : > { %v1842_v7 = vpop.f32.mrf.mxu1 }
 0x4e2   : > { %5359 = vst [vmem:[#allocation10_spill] sm:$0xff] %v4865_v3  ;;  %v4874_v26 = vadd.f32 %v1866_v19, %v4849_v47  ;;  %v1843_v59 = vadd.f32 %v4772_v13, %v1842_v7  ;;  %v1894_v27 = vpack.c.bf16 %v4865_v3, %v4880_v10  ;;  %v1871_v53 = vmul.f32 %v1851_v11, %v4877_v28  ;;  %v3876_v7 = vld [vmem:[%s5328_s6 + $0x68] sm:$0xff]   ;;  %v3879_v11 = vld [vmem:[%s5328_s6 + $0x50] sm:$0xff]  }
 0x4e3   : > { %v3692_v12 = vpop.f32.mrf.mxu1  ;;  %3729 = vmatprep.subr.bf16.mxu1 %v3876_v7 }
 0x4e4   : > { %5362 = vst [vmem:[#allocation13_spill] sm:$0xff] %v4874_v26  ;;  %v1854_v57 = vadd.f32 %v3692_v12, %v4772_v13  ;;  %v1893_v44 = vpack.c.bf16 %v4874_v26, %v4871_v8  ;;  %v1869_v50 = vmul.f32 %v1843_v59, %v4862_v23  ;;  %v4905_v19 = vadd.f32 %v1871_v53, %v4877_v28  ;;  %v3878_v59 = vld [vmem:[%s5328_s6 + $0x58] sm:$0xff]   ;;  %v3880_v12 = vld [vmem:[%s5328_s6 + $0x48] sm:$0xff]  }
 0x4e5   : > { %v1845_v54 = vpop.f32.mrf.mxu1  ;;  %3730 = vmatpush3.bf16.msra.mxu1 %v3876_v7 }
 0x4e6   : > { %v1872_v33 = vmul.f32 %v1854_v57, %v4868_v6  ;;  %v1846_v52 = vadd.f32 %v4772_v13, %v1845_v54  ;;  %3717 = vmatprep.mubr.bf16.mxu0 %v1893_v44  ;;  %v4899_v61 = vadd.f32 %v1869_v50, %v4862_v23  ;;  %5369 = vst [vmem:[#allocation20_spill] sm:$0xff] %v4905_v19  ;;  %v3881_v57 = vld [vmem:[%s5328_s6 + $0x40] sm:$0xff]  }
 0x4e7   : > { %3718 = vmatmul.mubr.bf16.gmra.mxu0 %v1894_v27  ;;  %3731 = vmatprep.subr.bf16.mxu1 %v3877_v4 }
 0x4e8   : > { %v1870_v2 = vmul.f32 %v1846_v52, %v4883_v36  ;;  %v4896_v46 = vadd.f32 %v1872_v33, %v4868_v6  ;;  %5367 = vst [vmem:[#allocation18_spill] sm:$0xff] %v4899_v61 }
 0x4e9   : > { %3732 = vmatpush3.bf16.msra.mxu1 %v3877_v4 }
 0x4ea   : > { %5366 = vst [vmem:[#allocation17_spill] sm:$0xff] %v4896_v46  ;;  %v4902_v9 = vadd.f32 %v1870_v2, %v4883_v36  ;;  %v1896_v0 = vpack.c.bf16 %v4896_v46, %v4905_v19  ;;  %3733 = vmatprep.subr.bf16.mxu1 %v3878_v59 }
 0x4ec   : > { %5368 = vst [vmem:[#allocation19_spill] sm:$0xff] %v4902_v9  ;;  %v1895_v13 = vpack.c.bf16 %v4902_v9, %v4899_v61 }
 0x4ed   : > { %3734 = vmatpush3.bf16.msra.mxu1 %v3878_v59 }
 0x4ee   : > { %3721 = vmatprep.mubr.bf16.mxu0 %v1895_v13  ;;  %3735 = vmatprep.subr.bf16.mxu1 %v3879_v11 }
 0x4ef   : > { %3722 = vmatmul.mubr.bf16.gmra.mxu0 %v1896_v0 }
 0x4f1   : > { %3736 = vmatpush3.bf16.msra.mxu1 %v3879_v11 }
 0x4f2   : > { %3737 = vmatprep.subr.bf16.mxu1 %v3880_v12 }
 0x4f5   : > { %3738 = vmatpush3.bf16.msra.mxu1 %v3880_v12 }
 0x4f6   : > { %3739 = vmatprep.subr.bf16.mxu1 %v3881_v57 }
 0x4f9   : > { %3740 = vmatpush3.bf16.msra.mxu1 %v3881_v57 }
 0x595   : > { %v4929_v44 = vpop.f32.mrf.mxu0 }
 0x596   : > { %v2065_v52 = vsel %vm1064_vm0, %v4929_v44, -inf }
 0x597   : > { %v4931_v54 = vpop.f32.mrf.mxu0 }
 0x598   : > { %v2059_v27 = vsel %vm1064_vm0, %v4931_v54, -inf  ;;  %4026 = vtanh.f32 %v4931_v54 }
 0x599   : > { %2060 = vmax.xlane.f32.xlu0 %v2059_v27  ;;  %v4935_v50 = vpop.f32.mrf.mxu0 }
 0x59a   : > { %4028 = vtanh.f32 %v4935_v50  ;;  %v2068_v0 = vsel %vm1064_vm0, %v4935_v50, -inf }
 0x59b   : > { %v4939_v33 = vpop.f32.mrf.mxu0 }
 0x59c   : > { %4030 = vtanh.f32 %v4939_v33  ;;  %v2062_v53 = vsel %vm1064_vm0, %v4939_v33, -inf }
 0x59d   : > { %4032 = vtanh.f32 %v4929_v44  ;;  %2066 = vmax.xlane.f32.xlu0 %v2065_v52  ;;  %2063 = vmax.xlane.f32.xlu1 %v2062_v53 }
 0x59e   : > { %v4947_v2 = vpop.f32.mrf.mxu0 }
 0x59f   : > { %v2077_v53 = vsel %vm1064_vm0, %v4947_v2, -inf }
 0x5a0   : > { %v4949_v13 = vpop.f32.mrf.mxu0 }
 0x5a1   : > { %2069 = vmax.xlane.f32.xlu0 %v2068_v0  ;;  %4034 = vtanh.f32 %v4949_v13  ;;  %v2071_v59 = vsel %vm1064_vm0, %v4949_v13, -inf }
 0x5a2   : > { %v4953_v7 = vpop.f32.mrf.mxu0 }
 0x5a3   : > { %4036 = vtanh.f32 %v4953_v7 }
 0x5a4   : > { %v4957_v4 = vpop.f32.mrf.mxu0 }
 0x5a5   : > { %4038 = vtanh.f32 %v4957_v4  ;;  %2072 = vmax.xlane.f32.xlu0 %v2071_v59  ;;  %v2074_v11 = vsel %vm1064_vm0, %v4957_v4, -inf  ;;  %v4027_v57 = vpop.eup %4026  ;;  %v2080_v59 = vsel %vm1064_vm0, %v4953_v7, -inf }
 0x5a6   : > { %4040 = vtanh.f32 %v4947_v2  ;;  %2075 = vmax.xlane.f32.xlu1 %v2074_v11 }
 0x5a7   : > { %v4965_v12 = vpop.f32.mrf.mxu0  ;;  %v4029_v27 = vpop.eup %4028 }
 0x5a9   : > { %v4967_v52 = vpop.f32.mrf.mxu0  ;;  %v4031_v0 = vpop.eup %4030  ;;  %2078 = vmax.xlane.f32.xlu0 %v2077_v53 }
 0x5aa   : > { %v4033_v55 = vpop.eup %4032  ;;  %2081 = vmax.xlane.f32.xlu1 %v2080_v59  ;;  %v2315_v9 = vpack.c.bf16 %v4031_v0, %v4027_v57  ;;  %4042 = vtanh.f32 %v4967_v52  ;;  %v2083_v36 = vsel %vm1064_vm0, %v4967_v52, -inf }
 0x5ab   : > { %v4973_v37 = vpop.f32.mrf.mxu0  ;;  %v2316_v11 = vpack.c.bf16 %v4029_v27, %v4033_v55 }
 0x5ac   : > { %4044 = vtanh.f32 %v4973_v37  ;;  %3741 = vmatprep.mubr.bf16.mxu1 %v2315_v9  ;;  %v2089_v9 = vsel %vm1064_vm0, %v4965_v12, -inf  ;;  %v2092_v59 = vsel %vm1064_vm0, %v4973_v37, -inf }
 0x5ad   : > { %v4977_v61 = vpop.f32.mrf.mxu0  ;;  %3742 = vmatmul.mubr.bf16.vlgmr.msra.gmra.mxu1 %v2316_v11  ;;  %2084 = vmax.xlane.f32.xlu0 %v2083_v36 }
 0x5ae   : > { %4046 = vtanh.f32 %v4977_v61  ;;  %v2086_v53 = vsel %vm1064_vm0, %v4977_v61, -inf  ;;  %v4035_v55 = vpop.eup %4034 }
 0x5af   : > { %4048 = vtanh.f32 %v4965_v12  ;;  %2087 = vmax.xlane.f32.xlu1 %v2086_v53  ;;  %v4985_v57 = vpop.f32.mrf.mxu0 }
 0x5b0   : > { %v4037_v0 = vpop.eup %4036 }
 0x5b1   : > { %v4987_v27 = vpop.f32.mrf.mxu0  ;;  %2090 = vmax.xlane.f32.xlu0 %v2089_v9 }
 0x5b2   : > { %v4039_v36 = vpop.eup %4038  ;;  %4050 = vtanh.f32 %v4987_v27  ;;  %v2095_v19 = vsel %vm1064_vm0, %v4987_v27, -inf }
 0x5b3   : > { %2093 = vmax.xlane.f32.xlu1 %v2092_v59  ;;  %v4993_v11 = vpop.f32.mrf.mxu0  ;;  %v4041_v46 = vpop.eup %4040  ;;  %v2317_v53 = vpack.c.bf16 %v4039_v36, %v4035_v55  ;;  %v2101_v59 = vsel %vm1064_vm0, %v4985_v57, -inf }
 0x5b4   : > { %4052 = vtanh.f32 %v4993_v11  ;;  %v2318_v23 = vpack.c.bf16 %v4037_v0, %v4041_v46  ;;  %v2104_v46 = vsel %vm1064_vm0, %v4993_v11, -inf }
 0x5b5   : > { %v4997_v6 = vpop.f32.mrf.mxu0  ;;  %3745 = vmatprep.mubr.bf16.mxu1 %v2317_v53  ;;  %2096 = vmax.xlane.f32.xlu0 %v2095_v19 }
 0x5b6   : > { %4054 = vtanh.f32 %v4997_v6  ;;  %v2098_v9 = vsel %vm1064_vm0, %v4997_v6, -inf  ;;  %3746 = vmatmul.mubr.bf16.gmra.mxu1 %v2318_v23 }
 0x5b7   : > { %4056 = vtanh.f32 %v4985_v57  ;;  %2099 = vmax.xlane.f32.xlu1 %v2098_v9  ;;  %v4043_v55 = vpop.eup %4042 }
 0x5b9   : > { %v4045_v36 = vpop.eup %4044  ;;  %2102 = vmax.xlane.f32.xlu0 %v2101_v59 }
 0x5bb   : > { %v4047_v0 = vpop.eup %4046  ;;  %2105 = vmax.xlane.f32.xlu1 %v2104_v46 }
 0x5bc   : > { %v4049_v53 = vpop.eup %4048  ;;  %v2319_v19 = vpack.c.bf16 %v4047_v0, %v4043_v55 }
 0x5bd   : > { %v2320_v28 = vpack.c.bf16 %v4045_v36, %v4049_v53 }
 0x5be   : > { %3749 = vmatprep.mubr.bf16.mxu1 %v2319_v19 }
 0x5bf   : > { %3750 = vmatmul.mubr.bf16.gmra.mxu1 %v2320_v28  ;;  %v4051_v26 = vpop.eup %4050 }
 0x5c1   : > { %v4053_v8 = vpop.eup %4052 }
 0x5c3   : > { %v4055_v23 = vpop.eup %4054 }
 0x5c4   : > { %v4057_v9 = vpop.eup %4056  ;;  %v2321_v47 = vpack.c.bf16 %v4055_v23, %v4051_v26 }
 0x5c5   : > { %v2322_v3 = vpack.c.bf16 %v4053_v8, %v4057_v9 }
 0x5c6   : > { %3753 = vmatprep.mubr.bf16.mxu1 %v2321_v47 }
 0x5c7   : > { %3754 = vmatmul.mubr.bf16.gmra.mxu1 %v2322_v3 }
 0x622   : > { %v2061_v40 = vpop.xlane.xlu0 %2060 }
 0x623   : > { %v2107_v59 = vsub.f32 %v4931_v54, %v2061_v40 }
 0x625   : > { %v2123_v32 = vmul.f32 1.442695, %v2107_v59 }
 0x626   : > { %v2067_v10 = vpop.xlane.xlu0 %2066  ;;  %v2064_v58 = vpop.xlane.xlu1 %2063 }
 0x627   : > { %4058 = vpow2.f32 %v2123_v32  ;;  %v2109_v55 = vsub.f32 %v4929_v44, %v2067_v10  ;;  %v2108_v36 = vsub.f32 %v4939_v33, %v2064_v58 }
 0x629   : > { %v2127_v28 = vmul.f32 1.442695, %v2109_v55  ;;  %v2125_v0 = vmul.f32 1.442695, %v2108_v36 }
 0x62a   : > { %v2070_v46 = vpop.xlane.xlu0 %2069 }
 0x62b   : > { %4060 = vpow2.f32 %v2127_v28  ;;  %v2110_v26 = vsub.f32 %v4935_v50, %v2070_v46 }
 0x62c   : > { %4062 = vpow2.f32 %v2125_v0 }
 0x62d   : > { %v2129_v8 = vmul.f32 1.442695, %v2110_v26 }
 0x62e   : > { %v2073_v47 = vpop.xlane.xlu0 %2072 }
 0x62f   : > { %v2111_v3 = vsub.f32 %v4949_v13, %v2073_v47  ;;  %v2076_v40 = vpop.xlane.xlu1 %2075  ;;  %4064 = vpow2.f32 %v2129_v8 }
 0x630   : > { %v2112_v54 = vsub.f32 %v4957_v4, %v2076_v40 }
 0x631   : > { %v2131_v53 = vmul.f32 1.442695, %v2111_v3 }
 0x632   : > { %v2133_v32 = vmul.f32 1.442695, %v2112_v54  ;;  %v2079_v10 = vpop.xlane.xlu0 %2078 }
 0x633   : > { %4066 = vpow2.f32 %v2131_v53  ;;  %v2113_v58 = vsub.f32 %v4947_v2, %v2079_v10  ;;  %v2082_v44 = vpop.xlane.xlu1 %2081 }
 0x634   : > { %v5016_v33 = vpop.eup %4058  ;;  %v2114_v50 = vsub.f32 %v4953_v7, %v2082_v44  ;;  %4068 = vpow2.f32 %v2133_v32 }
 0x635   : > { %v2135_v19 = vmul.f32 1.442695, %v2113_v58  ;;  %2171 = vrot.lane.b32.xlu0 %v5016_v33, %s4236_s22 }
 0x636   : > { %v2137_v13 = vmul.f32 1.442695, %v2114_v50  ;;  %v2085_v23 = vpop.xlane.xlu0 %2084 }
 0x637   : > { %4070 = vpow2.f32 %v2135_v19  ;;  %v2115_v4 = vsub.f32 %v4967_v52, %v2085_v23 }
 0x638   : > { %v2088_v9 = vpop.xlane.xlu1 %2087  ;;  %v5022_v59 = vpop.eup %4060  ;;  %4072 = vpow2.f32 %v2137_v13 }
 0x639   : > { %v2116_v2 = vsub.f32 %v4977_v61, %v2088_v9  ;;  %v2139_v55 = vmul.f32 1.442695, %v2115_v4  ;;  %2175 = vrot.lane.b32.xlu1 %v5022_v59, %s4236_s22  ;;  %v5028_v0 = vpop.eup %4062 }
 0x63a   : > { %v2091_v36 = vpop.xlane.xlu0 %2090 }
 0x63b   : > { %v2141_v7 = vmul.f32 1.442695, %v2116_v2  ;;  %4074 = vpow2.f32 %v2139_v55  ;;  %v2117_v28 = vsub.f32 %v4965_v12, %v2091_v36 }
 0x63c   : > { %v2094_v46 = vpop.xlane.xlu1 %2093  ;;  %v5033_v47 = vpop.eup %4064 }
 0x63d   : > { %v2118_v52 = vsub.f32 %v4973_v37, %v2094_v46  ;;  %v2143_v26 = vmul.f32 1.442695, %v2117_v28  ;;  %2173 = vrot.lane.b32.xlu1 %v5028_v0, %s4236_s22  ;;  %4076 = vpow2.f32 %v2141_v7 }
 0x63e   : > { %v2097_v8 = vpop.xlane.xlu0 %2096 }
 0x63f   : > { %v2145_v61 = vmul.f32 1.442695, %v2118_v52  ;;  %4078 = vpow2.f32 %v2143_v26  ;;  %v2119_v3 = vsub.f32 %v4987_v27, %v2097_v8 }
 0x640   : > { %v2100_v40 = vpop.xlane.xlu1 %2099  ;;  %v5036_v54 = vpop.eup %4066 }
 0x641   : > { %v2120_v12 = vsub.f32 %v4997_v6, %v2100_v40  ;;  %v2147_v53 = vmul.f32 1.442695, %v2119_v3  ;;  %2179 = vrot.lane.b32.xlu0 %v5036_v54, %s4236_s22  ;;  %2177 = vrot.lane.b32.xlu1 %v5033_v47, %s4236_s22  ;;  %4080 = vpow2.f32 %v2145_v61  ;;  %v5043_v10 = vpop.eup %4068 }
 0x642   : > { %v2103_v32 = vpop.xlane.xlu0 %2102 }
 0x643   : > { %v2149_v37 = vmul.f32 1.442695, %v2120_v12  ;;  %4082 = vpow2.f32 %v2147_v53  ;;  %v2121_v27 = vsub.f32 %v4985_v57, %v2103_v32 }
 0x644   : > { %v2106_v58 = vpop.xlane.xlu1 %2105  ;;  %v5046_v44 = vpop.eup %4070 }
 0x645   : > { %v2122_v6 = vsub.f32 %v4993_v11, %v2106_v58  ;;  %v2151_v50 = vmul.f32 1.442695, %v2121_v27  ;;  %2183 = vrot.lane.b32.xlu0 %v5046_v44, %s4236_s22  ;;  %2181 = vrot.lane.b32.xlu1 %v5043_v10, %s4236_s22  ;;  %4084 = vpow2.f32 %v2149_v37  ;;  %v5053_v19 = vpop.eup %4072 }
 0x647   : > { %4086 = vpow2.f32 %v2151_v50  ;;  %v2153_v13 = vmul.f32 1.442695, %v2122_v6 }
 0x648   : > { %v5055_v23 = vpop.eup %4074 }
 0x649   : > { %2187 = vrot.lane.b32.xlu0 %v5055_v23, %s4236_s22  ;;  %2185 = vrot.lane.b32.xlu1 %v5053_v19, %s4236_s22  ;;  %4088 = vpow2.f32 %v2153_v13 }
 0x64a   : > { %v5061_v57 = vpop.eup %4076 }
 0x64c   : > { %v5063_v11 = vpop.eup %4078 }
 0x64d   : > { %2191 = vrot.lane.b32.xlu0 %v5063_v11, %s4236_s22  ;;  %2189 = vrot.lane.b32.xlu1 %v5061_v57, %s4236_s22 }
 0x64e   : > { %v5069_v4 = vpop.eup %4080 }
 0x650   : > { %v5071_v9 = vpop.eup %4082 }
 0x651   : > { %2195 = vrot.lane.b32.xlu0 %v5071_v9, %s4236_s22  ;;  %2193 = vrot.lane.b32.xlu1 %v5069_v4, %s4236_s22 }
 0x652   : > { %v5077_v2 = vpop.eup %4084 }
 0x654   : > { %v5079_v55 = vpop.eup %4086 }
 0x655   : > { %2199 = vrot.lane.b32.xlu0 %v5079_v55, %s4236_s22  ;;  %2197 = vrot.lane.b32.xlu1 %v5077_v2, %s4236_s22 }
 0x656   : > { %v5085_v7 = vpop.eup %4088 }
 0x659   : > { %2201 = vrot.lane.b32.xlu1 %v5085_v7, %s4236_s22 }
 0x6a7   : > { %v2172_v36 = vpop.permute.xlu0 %2171 }
 0x6a8   : > { %v2219_v28 = vsel %vm1225_vm1, %v2172_v36, 0.0 }
 0x6a9   : > { %2220 = vadd.xlane.f32.xlu0 %v2219_v28 }
 0x6ab   : > { %v2176_v46 = vpop.permute.xlu1 %2175 }
 0x6ac   : > { %v2225_v52 = vsel %vm1225_vm1, %v2176_v46, 0.0 }
 0x6ad   : > { %2226 = vadd.xlane.f32.xlu0 %v2225_v52 }
 0x6af   : > { %v2174_v26 = vpop.permute.xlu1 %2173 }
 0x6b0   : > { %v2222_v61 = vsel %vm1225_vm1, %v2174_v26, 0.0 }
 0x6b1   : > { %2223 = vadd.xlane.f32.xlu1 %v2222_v61 }
 0x6b3   : > { %v2180_v8 = vpop.permute.xlu0 %2179  ;;  %v2178_v3 = vpop.permute.xlu1 %2177 }
 0x6b4   : > { %v2228_v40 = vsel %vm1225_vm1, %v2178_v3, 0.0  ;;  %v2231_v37 = vsel %vm1225_vm1, %v2180_v8, 0.0 }
 0x6b5   : > { %2229 = vadd.xlane.f32.xlu0 %v2228_v40 }
 0x6b7   : > { %v2184_v12 = vpop.permute.xlu0 %2183  ;;  %v2182_v53 = vpop.permute.xlu1 %2181 }
 0x6b8   : > { %v2234_v32 = vsel %vm1225_vm1, %v2182_v53, 0.0  ;;  %v2237_v6 = vsel %vm1225_vm1, %v2184_v12, 0.0 }
 0x6b9   : > { %2232 = vadd.xlane.f32.xlu0 %v2231_v37  ;;  %2235 = vadd.xlane.f32.xlu1 %v2234_v32 }
 0x6bb   : > { %v2188_v27 = vpop.permute.xlu0 %2187  ;;  %v2186_v58 = vpop.permute.xlu1 %2185 }
 0x6bc   : > { %v2240_v50 = vsel %vm1225_vm1, %v2186_v58, 0.0  ;;  %v2243_v28 = vsel %vm1225_vm1, %v2188_v27, 0.0 }
 0x6bd   : > { %2238 = vadd.xlane.f32.xlu0 %v2237_v6  ;;  %2241 = vadd.xlane.f32.xlu1 %v2240_v50 }
 0x6bf   : > { %v2192_v13 = vpop.permute.xlu0 %2191  ;;  %v2190_v36 = vpop.permute.xlu1 %2189 }
 0x6c0   : > { %v2246_v46 = vsel %vm1225_vm1, %v2190_v36, 0.0  ;;  %v2249_v61 = vsel %vm1225_vm1, %v2192_v13, 0.0 }
 0x6c1   : > { %2244 = vadd.xlane.f32.xlu0 %v2243_v28  ;;  %2247 = vadd.xlane.f32.xlu1 %v2246_v46 }
 0x6c3   : > { %v2196_v52 = vpop.permute.xlu0 %2195  ;;  %v2194_v26 = vpop.permute.xlu1 %2193 }
 0x6c4   : > { %v2252_v8 = vsel %vm1225_vm1, %v2194_v26, 0.0  ;;  %v2255_v40 = vsel %vm1225_vm1, %v2196_v52, 0.0 }
 0x6c5   : > { %2250 = vadd.xlane.f32.xlu0 %v2249_v61  ;;  %2253 = vadd.xlane.f32.xlu1 %v2252_v8 }
 0x6c7   : > { %v2198_v3 = vpop.permute.xlu1 %2197  ;;  %v2200_v53 = vpop.permute.xlu0 %2199 }
 0x6c8   : > { %v2258_v12 = vsel %vm1225_vm1, %v2198_v3, 0.0  ;;  %v2261_v32 = vsel %vm1225_vm1, %v2200_v53, 0.0 }
 0x6c9   : > { %2256 = vadd.xlane.f32.xlu0 %v2255_v40  ;;  %2259 = vadd.xlane.f32.xlu1 %v2258_v12 }
 0x6cb   : > { %v2202_v37 = vpop.permute.xlu1 %2201 }
 0x6cc   : > { %v2264_v27 = vsel %vm1225_vm1, %v2202_v37, 0.0 }
 0x6cd   : > { %2262 = vadd.xlane.f32.xlu0 %v2261_v32  ;;  %2265 = vadd.xlane.f32.xlu1 %v2264_v27 }
 0x732   : > { %v2221_v58 = vpop.xlane.xlu0 %2220 }
 0x733   : > { %4090 = vrcp.f32 %v2221_v58 }
 0x736   : > { %v2227_v6 = vpop.xlane.xlu0 %2226 }
 0x73a   : > { %v2224_v50 = vpop.xlane.xlu1 %2223 }
 0x73b   : > { %4092 = vrcp.f32 %v2224_v50 }
 0x73c   : > { %4094 = vrcp.f32 %v2227_v6 }
 0x73e   : > { %v2230_v13 = vpop.xlane.xlu0 %2229 }
 0x73f   : > { %4096 = vrcp.f32 %v2230_v13 }
 0x740   : > { %v4091_v46 = vpop.eup %4090 }
 0x741   : > { %v2283_v8 = vmul.f32 %v4091_v46, %v5016_v33 }
 0x742   : > { %v2233_v36 = vpop.xlane.xlu0 %2232  ;;  %v2236_v28 = vpop.xlane.xlu1 %2235 }
 0x743   : > { %4098 = vrcp.f32 %v2233_v36 }
 0x744   : > { %4100 = vrcp.f32 %v2236_v28 }
 0x746   : > { %v2239_v52 = vpop.xlane.xlu0 %2238  ;;  %v2242_v26 = vpop.xlane.xlu1 %2241 }
 0x747   : > { %4102 = vrcp.f32 %v2239_v52 }
 0x748   : > { %v4093_v61 = vpop.eup %4092  ;;  %4104 = vrcp.f32 %v2242_v26 }
 0x749   : > { %v2284_v3 = vmul.f32 %v4093_v61, %v5028_v0  ;;  %v4095_v40 = vpop.eup %4094 }
 0x74a   : > { %v2245_v12 = vpop.xlane.xlu0 %2244  ;;  %v2248_v53 = vpop.xlane.xlu1 %2247  ;;  %v2285_v27 = vmul.f32 %v4095_v40, %v5022_v59 }
 0x74b   : > { %4106 = vrcp.f32 %v2245_v12  ;;  %v2501_v37 = vpack.c.bf16 %v2284_v3, %v2283_v8 }
 0x74c   : > { %v4097_v32 = vpop.eup %4096  ;;  %4108 = vrcp.f32 %v2248_v53 }
 0x74d   : > { %2517 = vrot.lane.b32.xlu0 %v2501_v37, %s4236_s22  ;;  %v2286_v58 = vmul.f32 %v4097_v32, %v5033_v47 }
 0x74e   : > { %v2251_v6 = vpop.xlane.xlu0 %2250  ;;  %v2254_v50 = vpop.xlane.xlu1 %2253 }
 0x74f   : > { %4110 = vrcp.f32 %v2251_v6  ;;  %v2502_v13 = vpack.c.bf16 %v2286_v58, %v2285_v27 }
 0x750   : > { %v4099_v33 = vpop.eup %4098  ;;  %4112 = vrcp.f32 %v2254_v50 }
 0x751   : > { %v4101_v0 = vpop.eup %4100  ;;  %2519 = vrot.lane.b32.xlu1 %v2502_v13, %s4236_s22  ;;  %v2287_v36 = vmul.f32 %v4099_v33, %v5036_v54 }
 0x752   : > { %v2257_v28 = vpop.xlane.xlu0 %2256  ;;  %v2260_v46 = vpop.xlane.xlu1 %2259  ;;  %v2288_v52 = vmul.f32 %v4101_v0, %v5043_v10 }
 0x753   : > { %4114 = vrcp.f32 %v2257_v28 }
 0x754   : > { %v4103_v26 = vpop.eup %4102  ;;  %4116 = vrcp.f32 %v2260_v46  ;;  %v2503_v59 = vpack.c.bf16 %v2288_v52, %v2287_v36 }
 0x755   : > { %v4105_v47 = vpop.eup %4104  ;;  %v2289_v61 = vmul.f32 %v4103_v26, %v5046_v44 }
 0x756   : > { %2521 = vrot.lane.b32.xlu1 %v2503_v59, %s4236_s22  ;;  %v2263_v8 = vpop.xlane.xlu0 %2262  ;;  %v2266_v3 = vpop.xlane.xlu1 %2265  ;;  %v2290_v40 = vmul.f32 %v4105_v47, %v5053_v19 }
 0x757   : > { %4118 = vrcp.f32 %v2263_v8 }
 0x758   : > { %v4107_v12 = vpop.eup %4106  ;;  %4120 = vrcp.f32 %v2266_v3  ;;  %v2504_v54 = vpack.c.bf16 %v2290_v40, %v2289_v61 }
 0x759   : > { %v4109_v53 = vpop.eup %4108  ;;  %v2291_v10 = vmul.f32 %v4107_v12, %v5055_v23 }
 0x75a   : > { %2523 = vrot.lane.b32.xlu1 %v2504_v54, %s4236_s22  ;;  %v2292_v37 = vmul.f32 %v4109_v53, %v5061_v57 }
 0x75c   : > { %v4111_v32 = vpop.eup %4110  ;;  %v2505_v27 = vpack.c.bf16 %v2292_v37, %v2291_v10 }
 0x75d   : > { %v4113_v44 = vpop.eup %4112  ;;  %v2293_v58 = vmul.f32 %v4111_v32, %v5063_v11 }
 0x75e   : > { %2525 = vrot.lane.b32.xlu0 %v2505_v27, %s4236_s22  ;;  %v2294_v19 = vmul.f32 %v4113_v44, %v5069_v4  ;;  %v4226_v4 = vld [vmem:[%s5326_s4] ss:$0 sm:$0xff] }
 0x75f   : > { %v828_v47 = vadd.f32 %v4226_v4, %v4597_v24  ;;  %v849_v8 = vadd.f32 %v4226_v4, %v4603_v25  ;;  %v857_v54 = vadd.f32 %v4226_v4, %v4631_v38  ;;  %v844_v37 = vadd.f32 %v4226_v4, %v4621_v34 }
 0x760   : > { %v4115_v6 = vpop.eup %4114  ;;  %v2506_v50 = vpack.c.bf16 %v2294_v19, %v2293_v58  ;;  %v852_v27 = vadd.f32 %v4226_v4, %v4615_v30  ;;  %v873_v38 = vadd.f32 %v4226_v4, %v4642_v48  ;;  %v860_v34 = vadd.f32 %v4226_v4, %v4637_v41 }
 0x761   : > { %v4117_v13 = vpop.eup %4116  ;;  %v2295_v33 = vmul.f32 %v4115_v6, %v5071_v9  ;;  %v825_v9 = vadd.f32 %v4226_v4, %v4585_v21  ;;  %v836_v21 = vadd.f32 %v4226_v4, %v4591_v22  ;;  %v888_v40 = vmax.f32 %v828_v47, 0.0 }
 0x762   : > { %2527 = vrot.lane.b32.xlu1 %v2506_v50, %s4236_s22  ;;  %v2296_v23 = vmul.f32 %v4117_v13, %v5077_v2  ;;  %v833_v2 = vadd.f32 %v4226_v4, %v4579_v63  ;;  %v893_v63 = vmax.f32 %v849_v8, 0.0  ;;  %v895_v32 = vmax.f32 %v857_v54, 0.0  ;;  %v3888_v8 = vld [vmem:[%s5329_s7 + $0x48] sm:$0xff]  }
 0x763   : > { %v887_v52 = vmax.f32 %v825_v9, 0.0  ;;  %v890_v53 = vmax.f32 %v836_v21, 0.0  ;;  %v892_v22 = vmax.f32 %v844_v37, 0.0  ;;  %v894_v19 = vmax.f32 %v852_v27, 0.0  ;;  %v3743_v21 = vpop.f32.mrf.mxu1 }
 0x764   : > { %v4119_v0 = vpop.eup %4118  ;;  %v2507_v57 = vpack.c.bf16 %v2296_v23, %v2295_v33  ;;  %v889_v26 = vmax.f32 %v833_v2, 0.0  ;;  %v899_v13 = vmax.f32 %v873_v38, 0.0  ;;  %v868_v33 = vadd.f32 %v4226_v4, %v4635_v39  ;;  %v3883_v39 = vld [vmem:[%s5329_s7 + $0x70] sm:$0xff]  }
 0x765   : > { %v4121_v36 = vpop.eup %4120  ;;  %v2297_v28 = vmul.f32 %v4119_v0, %v5079_v55  ;;  %v4227_v55 = vld [vmem:[%s5333_s11] ss:$0 sm:$0xff]  ;;  %v896_v23 = vmax.f32 %v860_v34, 0.0 }
 0x766   : > { %2529 = vrot.lane.b32.xlu0 %v2507_v57, %s4236_s22  ;;  %v2298_v11 = vmul.f32 %v4121_v36, %v5085_v7  ;;  %v2942_v59 = vmul.f32 %v4227_v55, %v887_v52  ;;  %v841_v7 = vadd.f32 %v4226_v4, %v4609_v29  ;;  %v2944_v61 = vmul.f32 %v4227_v55, %v889_v26 }
 0x767   : > { %v2943_v10 = vmul.f32 %v4227_v55, %v888_v40  ;;  %v2948_v24 = vmul.f32 %v4227_v55, %v893_v63  ;;  %v865_v29 = vadd.f32 %v4226_v4, %v4627_v35  ;;  %v2945_v25 = vmul.f32 %v4227_v55, %v890_v53  ;;  %v2422_v40 = vpop.f32.mrf.mxu1 }
 0x768   : > { %v2508_v46 = vpack.c.bf16 %v2298_v11, %v2297_v28  ;;  %v891_v3 = vmax.f32 %v841_v7, 0.0  ;;  %v2950_v58 = vmul.f32 %v4227_v55, %v895_v32  ;;  %v2947_v6 = vmul.f32 %v4227_v55, %v892_v22  ;;  %v3882_v11 = vld [vmem:[%s5329_s7 + $0x78] sm:$0xff]  }
 0x769   : > { %v897_v44 = vmax.f32 %v865_v29, 0.0  ;;  %v2949_v35 = vmul.f32 %v4227_v55, %v894_v19  ;;  %v2954_v30 = vmul.f32 %v4227_v55, %v899_v13  ;;  %v898_v0 = vmax.f32 %v868_v33, 0.0  ;;  %3775 = vmatprep.subr.bf16.mxu1 %v3882_v11  ;;  %v3744_v63 = vpop.f32.mrf.mxu1 }
 0x76a   : > { %2531 = vrot.lane.b32.xlu1 %v2508_v46, %s4236_s22  ;;  %v2946_v12 = vmul.f32 %v4227_v55, %v891_v3  ;;  %v2951_v57 = vmul.f32 %v4227_v55, %v896_v23  ;;  %v876_v36 = vadd.f32 %v4226_v4, %v4747_v5  ;;  %3776 = vmatpush3.bf16.msra.mxu1 %v3882_v11  ;;  %v3884_v5 = vld [vmem:[%s5329_s7 + $0x68] sm:$0xff]   ;;  %v3885_v46 = vld [vmem:[%s5329_s7 + $0x60] sm:$0xff]   ;;  %v3886_v4 = vld [vmem:[%s5329_s7 + $0x58] sm:$0xff]   ;;  %4122 = vtanh.f32 %v2422_v40 }
 0x76b   : > { %v2952_v50 = vmul.f32 %v4227_v55, %v897_v44  ;;  %v2953_v48 = vmul.f32 %v4227_v55, %v898_v0  ;;  %3777 = vmatprep.subr.bf16.mxu1 %v3883_v39  ;;  %v3889_v3 = vld [vmem:[%s5329_s7 + $0x40] sm:$0xff]   ;;  %4124 = vtanh.f32 %v3744_v63 }
 0x76c   : > { %v900_v28 = vmax.f32 %v876_v36, 0.0 }
 0x76e   : > { %v2955_v41 = vmul.f32 %v4227_v55, %v900_v28  ;;  %3778 = vmatpush3.bf16.msra.mxu1 %v3883_v39 }
 0x76f   : > { %3779 = vmatprep.subr.bf16.mxu1 %v3884_v5 }
 0x772   : > { %3780 = vmatpush3.bf16.msra.mxu1 %v3884_v5 }
 0x773   : > { %3781 = vmatprep.subr.bf16.mxu1 %v3885_v46 }
 0x776   : > { %3782 = vmatpush3.bf16.msra.mxu1 %v3885_v46 }
 0x777   : > { %3783 = vmatprep.subr.bf16.mxu1 %v3886_v4 }
 0x77a   : > { %3784 = vmatpush3.bf16.msra.mxu1 %v3886_v4 }
 0x785   : > { %2958 = vadd.xlane.f32.xlu0 %v2942_v59 }
 0x789   : > { %2962 = vadd.xlane.f32.xlu0 %v2944_v61  ;;  %v3887_v61 = vld [vmem:[%s5329_s7 + $0x50] sm:$0xff]  }
 0x78a   : > { %3785 = vmatprep.subr.bf16.mxu1 %v3887_v61 }
 0x78b   : > { %3786 = vmatpush3.bf16.msra.mxu1 %v3887_v61 }
 0x78c   : > { %3787 = vmatprep.subr.bf16.mxu1 %v3888_v8 }
 0x78d   : > { %2966 = vadd.xlane.f32.xlu0 %v2946_v12  ;;  %v2425_v12 = vpop.f32.mrf.mxu1 }
 0x78e   : > { %2960 = vadd.xlane.f32.xlu1 %v2943_v10  ;;  %4126 = vtanh.f32 %v2425_v12 }
 0x78f   : > { %3788 = vmatpush3.bf16.msra.mxu1 %v3888_v8  ;;  %v3747_v54 = vpop.f32.mrf.mxu1  ;;  %4128 = vtanh.f32 %v3743_v21 }
 0x790   : > { %3789 = vmatprep.subr.bf16.mxu1 %v3889_v3 }
 0x791   : > { %2970 = vadd.xlane.f32.xlu0 %v2948_v24  ;;  %v2438_v53 = vpop.f32.mrf.mxu1 }
 0x792   : > { %2964 = vadd.xlane.f32.xlu1 %v2945_v25  ;;  %4130 = vtanh.f32 %v2438_v53 }
 0x793   : > { %3790 = vmatpush3.bf16.msra.mxu1 %v3889_v3  ;;  %v3748_v10 = vpop.f32.mrf.mxu1 }
 0x794   : > { %4132 = vtanh.f32 %v3748_v10 }
 0x795   : > { %2974 = vadd.xlane.f32.xlu0 %v2950_v58  ;;  %v2441_v37 = vpop.f32.mrf.mxu1  ;;  %v4123_v58 = vpop.eup %4122 }
 0x796   : > { %2968 = vadd.xlane.f32.xlu1 %v2947_v6  ;;  %4134 = vtanh.f32 %v2441_v37  ;;  %v4125_v19 = vpop.eup %4124 }
 0x797   : > { %v3751_v24 = vpop.f32.mrf.mxu1  ;;  %4136 = vtanh.f32 %v3747_v54 }
 0x799   : > { %2978 = vadd.xlane.f32.xlu0 %v2952_v50  ;;  %v2454_v29 = vpop.f32.mrf.mxu1 }
 0x79a   : > { %2972 = vadd.xlane.f32.xlu1 %v2949_v35  ;;  %4138 = vtanh.f32 %v2454_v29 }
 0x79b   : > { %v3752_v32 = vpop.f32.mrf.mxu1  ;;  %v4127_v6 = vpop.eup %4126 }
 0x79c   : > { %v4129_v13 = vpop.eup %4128  ;;  %4140 = vtanh.f32 %v3752_v32 }
 0x79d   : > { %2982 = vadd.xlane.f32.xlu0 %v2954_v30  ;;  %v2457_v25 = vpop.f32.mrf.mxu1 }
 0x79e   : > { %2976 = vadd.xlane.f32.xlu1 %v2951_v57  ;;  %4142 = vtanh.f32 %v2457_v25 }
 0x79f   : > { %v3755_v44 = vpop.f32.mrf.mxu1  ;;  %4144 = vtanh.f32 %v3751_v24 }
 0x7a1   : > { %v2470_v35 = vpop.f32.mrf.mxu1 }
 0x7a2   : > { %2980 = vadd.xlane.f32.xlu1 %v2953_v48  ;;  %4146 = vtanh.f32 %v2470_v35 }
 0x7a3   : > { %v3756_v48 = vpop.f32.mrf.mxu1 }
 0x7a4   : > { %4148 = vtanh.f32 %v3756_v48 }
 0x7a5   : > { %v2473_v46 = vpop.f32.mrf.mxu1 }
 0x7a6   : > { %2984 = vadd.xlane.f32.xlu1 %v2955_v41  ;;  %v4131_v41 = vpop.eup %4130  ;;  %4150 = vtanh.f32 %v2473_v46 }
 0x7a7   : > { %v4133_v39 = vpop.eup %4132  ;;  %4152 = vtanh.f32 %v3755_v44 }
 0x7a8   : > { %v4135_v5 = vpop.eup %4134 }
 0x7bf   : > { %v2518_v9 = vpop.permute.xlu0 %2517 }
 0x7c0   : > { %3759 = vmatprep.mubr.msk.bf16.mxu0 %vm1225_vm1, %v2518_v9 }
 0x7c3   : > { %v2520_v2 = vpop.permute.xlu1 %2519 }
 0x7c4   : > { %3760 = vmatmul.mubr.msk.bf16.vlgmr.msra.gmra.mxu0 %vm1225_vm1, %v2520_v2  ;;  %v4137_v2 = vpop.eup %4136 }
 0x7c5   : > { %v4139_v8 = vpop.eup %4138 }
 0x7c6   : > { %v4141_v21 = vpop.eup %4140 }
 0x7c7   : > { %v4143_v40 = vpop.eup %4142 }
 0x7c8   : > { %v2522_v52 = vpop.permute.xlu1 %2521  ;;  %v4145_v54 = vpop.eup %4144 }
 0x7c9   : > { %3763 = vmatprep.mubr.msk.bf16.mxu0 %vm1225_vm1, %v2522_v52 }
 0x7cc   : > { %v2524_v26 = vpop.permute.xlu1 %2523 }
 0x7cd   : > { %3764 = vmatmul.mubr.msk.bf16.gmra.mxu0 %vm1225_vm1, %v2524_v26 }
 0x7d0   : > { %v2526_v55 = vpop.permute.xlu0 %2525 }
 0x7d1   : > { %3767 = vmatprep.mubr.msk.bf16.mxu0 %vm1225_vm1, %v2526_v55 }
 0x7d4   : > { %v2528_v59 = vpop.permute.xlu1 %2527 }
 0x7d5   : > { %3768 = vmatmul.mubr.msk.bf16.gmra.mxu0 %vm1225_vm1, %v2528_v59 }
 0x7d8   : > { %v2530_v7 = vpop.permute.xlu0 %2529 }
 0x7d9   : > { %3771 = vmatprep.mubr.msk.bf16.mxu0 %vm1225_vm1, %v2530_v7 }
 0x7dc   : > { %v2532_v47 = vpop.permute.xlu1 %2531 }
 0x7dd   : > { %3772 = vmatmul.mubr.msk.bf16.gmra.mxu0 %vm1225_vm1, %v2532_v47 }
 0x884   : > { %v3761_v27 = vpop.f32.mrf.mxu0 }
 0x885   : > { %v2656_v30 = vmul.f32 %v4129_v13, %v3761_v27  ;;  %v4147_v27 = vpop.eup %4146 }
 0x886   : > { %v2591_v22 = vpop.f32.mrf.mxu0  ;;  %v4149_v44 = vpop.eup %4148 }
 0x887   : > { %v2654_v33 = vmul.f32 %v4123_v58, %v2591_v22  ;;  %v4151_v58 = vpop.eup %4150 }
 0x888   : > { %v3762_v38 = vpop.f32.mrf.mxu0 }
 0x889   : > { %v2657_v34 = vmul.f32 %v4125_v19, %v3762_v38 }
 0x88a   : > { %v2594_v50 = vpop.f32.mrf.mxu0 }
 0x88b   : > { %v2655_v23 = vmul.f32 %v4127_v6, %v2594_v50  ;;  %v2671_v36 = vpack.c.bf16 %v2657_v34, %v2656_v30  ;;  %v4153_v6 = vpop.eup %4152 }
 0x88d   : > { %v2670_v0 = vpack.c.bf16 %v2655_v23, %v2654_v33  ;;  %v3765_v57 = vpop.f32.mrf.mxu0  ;;  %v5184_v23 = vld [vmem:[%s5331_s9 + $0x1] ss:$0 sm:$0xff] }
 0x88e   : > { %v2660_v55 = vmul.f32 %v4137_v2, %v3765_v57 }
 0x88f   : > { %v2607_v28 = vpop.f32.mrf.mxu0  ;;  %3791 = vmatprep.mubr.bf16.mxu1 %v2670_v0 }
 0x890   : > { %3792 = vmatmul.mubr.bf16.vlgmr.msra.gmra.mxu1 %v2671_v36  ;;  %v2658_v52 = vmul.f32 %v4131_v41, %v2607_v28  ;;  %v5192_v41 = vld [vmem:[%s5332_s10] ss:$0 sm:$0xff] }
 0x891   : > { %v3766_v11 = vpop.f32.mrf.mxu0 }
 0x892   : > { %v2661_v4 = vmul.f32 %v4133_v39, %v3766_v11 }
 0x893   : > { %v2610_v9 = vpop.f32.mrf.mxu0 }
 0x894   : > { %v2659_v26 = vmul.f32 %v4135_v5, %v2610_v9  ;;  %v2673_v47 = vpack.c.bf16 %v2661_v4, %v2660_v55 }
 0x895   : > { %v3769_v59 = vpop.f32.mrf.mxu0 }
 0x896   : > { %v2672_v7 = vpack.c.bf16 %v2659_v26, %v2658_v52  ;;  %v2664_v37 = vmul.f32 %v4145_v54, %v3769_v59 }
 0x897   : > { %v2623_v61 = vpop.f32.mrf.mxu0 }
 0x898   : > { %3795 = vmatprep.mubr.bf16.mxu1 %v2672_v7  ;;  %v2662_v53 = vmul.f32 %v4139_v8, %v2623_v61 }
 0x899   : > { %v3770_v3 = vpop.f32.mrf.mxu0  ;;  %3796 = vmatmul.mubr.bf16.gmra.mxu1 %v2673_v47 }
 0x89a   : > { %v2665_v63 = vmul.f32 %v4141_v21, %v3770_v3 }
 0x89b   : > { %v2626_v12 = vpop.f32.mrf.mxu0 }
 0x89c   : > { %v2663_v10 = vmul.f32 %v4143_v40, %v2626_v12  ;;  %v2675_v32 = vpack.c.bf16 %v2665_v63, %v2664_v37  ;;  %v5370_v37 = vld [vmem:[#allocation7_spill] sm:$0xff] }
 0x89d   : > { %v3773_v24 = vpop.f32.mrf.mxu0 }
 0x89e   : > { %v2674_v29 = vpack.c.bf16 %v2663_v10, %v2662_v53  ;;  %v2668_v13 = vmul.f32 %v4153_v6, %v3773_v24 }
 0x89f   : > { %v2639_v25 = vpop.f32.mrf.mxu0 }
 0x8a0   : > { %3799 = vmatprep.mubr.bf16.mxu1 %v2674_v29  ;;  %v2666_v34 = vmul.f32 %v4147_v27, %v2639_v25  ;;  %v5372_v27 = vld [vmem:[#allocation5_spill] sm:$0xff] }
 0x8a1   : > { %v3774_v22 = vpop.f32.mrf.mxu0  ;;  %3800 = vmatmul.mubr.bf16.gmra.mxu1 %v2675_v32 }
 0x8a2   : > { %v2669_v38 = vmul.f32 %v4149_v44, %v3774_v22 }
 0x8a3   : > { %v2642_v19 = vpop.f32.mrf.mxu0 }
 0x8a4   : > { %v2667_v50 = vmul.f32 %v4151_v58, %v2642_v19  ;;  %v2677_v33 = vpack.c.bf16 %v2669_v38, %v2668_v13  ;;  %v5373_v58 = vld [vmem:[#allocation6_spill] sm:$0xff]  ;;  %v5375_v13 = vld [vmem:[#allocation8_spill] sm:$0xff] }
 0x8a6   : > { %v2676_v35 = vpack.c.bf16 %v2667_v50, %v2666_v34  ;;  %v5374_v34 = vld [vmem:[#allocation10_spill] sm:$0xff] }
 0x8a8   : > { %3803 = vmatprep.mubr.bf16.mxu1 %v2676_v35 }
 0x8a9   : > { %3804 = vmatmul.mubr.bf16.gmra.mxu1 %v2677_v33 }
 0x950   : > { %v3793_v30 = vpop.f32.mrf.mxu1 }
 0x951   : > { %v2794_v0 = vadd.f32 %v3793_v30, %v5184_v23  ;;  %v5376_v30 = vld [vmem:[#allocation12_spill] sm:$0xff] }
 0x952   : > { %v2785_v57 = vpop.f32.mrf.mxu1 }
 0x953   : > { %v2850_v36 = vmul.f32 %v2794_v0, %v4781_v18  ;;  %v2786_v48 = vadd.f32 %v5184_v23, %v2785_v57 }
 0x954   : > { %v3794_v28 = vpop.f32.mrf.mxu1 }
 0x955   : > { %v2866_v11 = vadd.f32 %v2850_v36, %v4808_v62  ;;  %v2848_v39 = vmul.f32 %v2786_v48, %v4775_v56  ;;  %v2797_v5 = vadd.f32 %v3794_v28, %v5184_v23  ;;  %v5377_v48 = vld [vmem:[#allocation13_spill] sm:$0xff] }
 0x956   : > { %v2788_v46 = vpop.f32.mrf.mxu1 }
 0x957   : > { %v2864_v4 = vadd.f32 %v2848_v39, %v4796_v49  ;;  %v2851_v9 = vmul.f32 %v2797_v5, %v4778_v16  ;;  %v2789_v18 = vadd.f32 %v5184_v23, %v2788_v46  ;;  %v2889_v2 = vmul.f32 %v5192_v41, %v2866_v11  ;;  %v5378_v11 = vld [vmem:[#allocation14_spill] sm:$0xff] }
 0x959   : > { %v2849_v52 = vmul.f32 %v2789_v18, %v4784_v20  ;;  %v3797_v26 = vpop.f32.mrf.mxu1  ;;  %2907 = vadd.xlane.f32.xlu0 %v2889_v2  ;;  %v2867_v62 = vadd.f32 %v2851_v9, %v4793_v43  ;;  %v2887_v7 = vmul.f32 %v5192_v41, %v2864_v4  ;;  %v5379_v18 = vld [vmem:[#allocation20_spill] sm:$0xff] }
 0x95a   : > { %v2810_v55 = vadd.f32 %v3797_v26, %v5184_v23 }
 0x95b   : > { %v2865_v56 = vadd.f32 %v2849_v52, %v4799_v42  ;;  %v2801_v59 = vpop.f32.mrf.mxu1  ;;  %v2890_v42 = vmul.f32 %v5192_v41, %v2867_v62  ;;  %v5380_v52 = vld [vmem:[#allocation9_spill] sm:$0xff] }
 0x95c   : > { %v2854_v49 = vmul.f32 %v2810_v55, %v4811_v45  ;;  %v2802_v16 = vadd.f32 %v5184_v23, %v2801_v59 }
 0x95d   : > { %v3798_v47 = vpop.f32.mrf.mxu1  ;;  %2903 = vadd.xlane.f32.xlu0 %v2887_v7  ;;  %v2888_v61 = vmul.f32 %v5192_v41, %v2865_v56  ;;  %v5381_v56 = vld [vmem:[#allocation11_spill] sm:$0xff] }
 0x95e   : > { %v2813_v20 = vadd.f32 %v3798_v47, %v5184_v23  ;;  %v2870_v8 = vadd.f32 %v2854_v49, %v4846_v51  ;;  %v2852_v3 = vmul.f32 %v2802_v16, %v4802_v60  ;;  %v5382_v16 = vld [vmem:[#allocation17_spill] sm:$0xff] }
 0x95f   : > { %v2804_v43 = vpop.f32.mrf.mxu1  ;;  %2905 = vadd.xlane.f32.xlu1 %v2888_v61  ;;  %v5383_v61 = vld [vmem:[#allocation16_spill] sm:$0xff] }
 0x960   : > { %v2855_v21 = vmul.f32 %v2813_v20, %v4805_v14  ;;  %v2805_v45 = vadd.f32 %v5184_v23, %v2804_v43  ;;  %v2868_v51 = vadd.f32 %v2852_v3, %v4837_v15  ;;  %v2893_v60 = vmul.f32 %v5192_v41, %v2870_v8  ;;  %v5384_v8 = vld [vmem:[#allocation18_spill] sm:$0xff] }
 0x961   : > { %v3801_v40 = vpop.f32.mrf.mxu1  ;;  %2909 = vadd.xlane.f32.xlu0 %v2890_v42  ;;  %v5385_v42 = vld [vmem:[#allocation19_spill] sm:$0xff] }
 0x962   : > { %v2871_v63 = vadd.f32 %v2855_v21, %v4831_v31  ;;  %v2853_v12 = vmul.f32 %v2805_v45, %v4816_v1  ;;  %v2826_v54 = vadd.f32 %v3801_v40, %v5184_v23  ;;  %v5371_v1 = vld [vmem:[#allocation15_spill] sm:$0xff]  ;;  %v2891_v44 = vmul.f32 %v5192_v41, %v2868_v51 }
 0x963   : > { %v2817_v53 = vpop.f32.mrf.mxu1 }
 0x964   : > { %v2869_v10 = vadd.f32 %v2853_v12, %v4840_v17  ;;  %v2858_v24 = vmul.f32 %v2826_v54, %v5370_v37  ;;  %v2818_v14 = vadd.f32 %v5184_v23, %v2817_v53  ;;  %v2894_v29 = vmul.f32 %v5192_v41, %v2871_v63  ;;  %v5386_v63 = vld [vmem:[#allocation3_spill] sm:$0xff]  ;;  %v5387_v12 = vld [vmem:[#allocation4_spill] sm:$0xff]  ;;  %v2959_v54 = vpop.xlane.xlu0 %2958  ;;  %v2961_v53 = vpop.xlane.xlu1 %2960 }
 0x965   : > { %v3802_v32 = vpop.f32.mrf.mxu1  ;;  %2915 = vadd.xlane.f32.xlu0 %v2893_v60 }
 0x966   : > { %v2829_v31 = vadd.f32 %v3802_v32, %v5184_v23  ;;  %2917 = vadd.xlane.f32.xlu1 %v2894_v29  ;;  %v2874_v25 = vadd.f32 %v2858_v24, %v5371_v1  ;;  %v2856_v15 = vmul.f32 %v2818_v14, %v5372_v27  ;;  %v2892_v19 = vmul.f32 %v5192_v41, %v2869_v10 }
 0x967   : > { %v2820_v22 = vpop.f32.mrf.mxu1 }
 0x968   : > { %v2859_v17 = vmul.f32 %v2829_v31, %v5373_v58  ;;  %v2821_v38 = vadd.f32 %v5184_v23, %v2820_v22  ;;  %v2872_v0 = vadd.f32 %v2856_v15, %v5376_v30  ;;  %v2897_v36 = vmul.f32 %v5192_v41, %v2874_v25  ;;  %v2963_v51 = vpop.xlane.xlu0 %2962  ;;  %v2965_v10 = vpop.xlane.xlu1 %2964  ;;  %v5259_v25 = vld [vmem:[#allocation2] ss:$0 sm:$0xff] }
 0x969   : > { %v3805_v6 = vpop.f32.mrf.mxu1  ;;  %2911 = vadd.xlane.f32.xlu0 %v2891_v44 }
 0x96a   : > { %v2875_v50 = vadd.f32 %v2859_v17, %v5374_v34  ;;  %v2857_v35 = vmul.f32 %v2821_v38, %v5375_v13  ;;  %v2842_v33 = vadd.f32 %v3805_v6, %v5184_v23  ;;  %2913 = vadd.xlane.f32.xlu1 %v2892_v19  ;;  %v2895_v62 = vmul.f32 %v5192_v41, %v2872_v0 }
 0x96b   : > { %v2833_v57 = vpop.f32.mrf.mxu1 }
 0x96c   : > { %v2873_v28 = vadd.f32 %v2857_v35, %v5377_v48  ;;  %v2862_v39 = vmul.f32 %v2842_v33, %v5378_v11  ;;  %v2834_v5 = vadd.f32 %v5184_v23, %v2833_v57  ;;  %v2898_v46 = vmul.f32 %v5192_v41, %v2875_v50  ;;  %v2967_v60 = vpop.xlane.xlu0 %2966  ;;  %v2969_v24 = vpop.xlane.xlu1 %2968 }
 0x96d   : > { %v3806_v4 = vpop.f32.mrf.mxu1  ;;  %2923 = vadd.xlane.f32.xlu0 %v2897_v36 }
 0x96e   : > { %v2845_v9 = vadd.f32 %v3806_v4, %v5184_v23  ;;  %2925 = vadd.xlane.f32.xlu1 %v2898_v46  ;;  %v2878_v2 = vadd.f32 %v2862_v39, %v5379_v18  ;;  %v2860_v26 = vmul.f32 %v2834_v5, %v5380_v52  ;;  %v2896_v49 = vmul.f32 %v5192_v41, %v2873_v28 }
 0x96f   : > { %v2836_v55 = vpop.f32.mrf.mxu1 }
 0x970   : > { %v2863_v59 = vmul.f32 %v2845_v9, %v5381_v56  ;;  %v2837_v7 = vadd.f32 %v5184_v23, %v2836_v55  ;;  %v2876_v3 = vadd.f32 %v2860_v26, %v5384_v8  ;;  %v2901_v43 = vmul.f32 %v5192_v41, %v2878_v2  ;;  %v2971_v37 = vpop.xlane.xlu0 %2970  ;;  %v2973_v29 = vpop.xlane.xlu1 %2972 }
 0x971   : > { %2919 = vadd.xlane.f32.xlu0 %v2895_v62 }
 0x972   : > { %v2879_v47 = vadd.f32 %v2863_v59, %v5382_v16  ;;  %v2861_v20 = vmul.f32 %v2837_v7, %v5383_v61  ;;  %2921 = vadd.xlane.f32.xlu1 %v2896_v49  ;;  %v2899_v23 = vmul.f32 %v5192_v41, %v2876_v3 }
 0x974   : > { %v2877_v21 = vadd.f32 %v2861_v20, %v5385_v42  ;;  %v2902_v45 = vmul.f32 %v5192_v41, %v2879_v47  ;;  %v2975_v14 = vpop.xlane.xlu0 %2974  ;;  %v2977_v31 = vpop.xlane.xlu1 %2976 }
 0x975   : > { %2931 = vadd.xlane.f32.xlu0 %v2901_v43 }
 0x976   : > { %2933 = vadd.xlane.f32.xlu1 %v2902_v45  ;;  %v2900_v40 = vmul.f32 %v5192_v41, %v2877_v21 }
 0x978   : > { %v2979_v32 = vpop.xlane.xlu0 %2978  ;;  %v2981_v41 = vpop.xlane.xlu1 %2980 }
 0x979   : > { %2927 = vadd.xlane.f32.xlu0 %v2899_v23 }
 0x97a   : > { %2929 = vadd.xlane.f32.xlu1 %v2900_v40 }
 0x97c   : > { %v5257_v1 = vpop.xlane.xlu0 %2982  ;;  %v5261_v22 = vpop.xlane.xlu1 %2984 }
 0x97d   : > { %2986 = vadd.xlane.f32.xlu0 %v5386_v63 }
 0x97e   : > { %2988 = vadd.xlane.f32.xlu1 %v5387_v12 }
 0x9e2   : > { %v2908_v27 = vpop.xlane.xlu0 %2907 }
 0x9e3   : > { %v2992_v15 = vadd.f32 %v2963_v51, %v2908_v27 }
 0x9e5   : > { %v3015_v44 = vadd.f32 %v5259_v25, %v2992_v15 }
 0x9e6   : > { %v2904_v58 = vpop.xlane.xlu0 %2903 }
 0x9e7   : > { %v3353_v17 = vmul.f32 -1.442695, %v3015_v44  ;;  %v2990_v38 = vadd.f32 %v2959_v54, %v2904_v58 }
 0x9e8   : > { %v2906_v19 = vpop.xlane.xlu1 %2905 }
 0x9e9   : > { %4154 = vpow2.f32 %v3353_v17  ;;  %v3013_v6 = vadd.f32 %v5259_v25, %v2990_v38  ;;  %v2991_v34 = vadd.f32 %v2961_v53, %v2906_v19 }
 0x9ea   : > { %v2910_v50 = vpop.xlane.xlu0 %2909 }
 0x9eb   : > { %v3351_v13 = vmul.f32 -1.442695, %v3013_v6  ;;  %v3014_v35 = vadd.f32 %v5259_v25, %v2991_v34  ;;  %v2993_v33 = vadd.f32 %v2965_v10, %v2910_v50 }
 0x9ed   : > { %4156 = vpow2.f32 %v3351_v13  ;;  %v3352_v30 = vmul.f32 -1.442695, %v3014_v35  ;;  %v3016_v0 = vadd.f32 %v5259_v25, %v2993_v33 }
 0x9ee   : > { %v2916_v57 = vpop.xlane.xlu0 %2915 }
 0x9ef   : > { %4158 = vpow2.f32 %v3352_v30  ;;  %v3354_v36 = vmul.f32 -1.442695, %v3016_v0  ;;  %v2996_v48 = vadd.f32 %v2971_v37, %v2916_v57  ;;  %v2918_v28 = vpop.xlane.xlu1 %2917 }
 0x9f0   : > { %v2997_v11 = vadd.f32 %v2973_v29, %v2918_v28 }
 0x9f1   : > { %4160 = vpow2.f32 %v3354_v36  ;;  %v3019_v39 = vadd.f32 %v5259_v25, %v2996_v48 }
 0x9f2   : > { %v3020_v5 = vadd.f32 %v5259_v25, %v2997_v11  ;;  %v2912_v46 = vpop.xlane.xlu0 %2911 }
 0x9f3   : > { %v3357_v4 = vmul.f32 -1.442695, %v3019_v39  ;;  %v2994_v9 = vadd.f32 %v2967_v60, %v2912_v46  ;;  %v2914_v18 = vpop.xlane.xlu1 %2913 }
 0x9f4   : > { %v3358_v2 = vmul.f32 -1.442695, %v3020_v5  ;;  %v2995_v52 = vadd.f32 %v2969_v24, %v2914_v18 }
 0x9f5   : > { %4162 = vpow2.f32 %v3357_v4  ;;  %v3017_v26 = vadd.f32 %v5259_v25, %v2994_v9 }
 0x9f6   : > { %v4155_v55 = vpop.eup %4154  ;;  %4164 = vpow2.f32 %v3358_v2  ;;  %v3018_v62 = vadd.f32 %v5259_v25, %v2995_v52  ;;  %v2924_v56 = vpop.xlane.xlu0 %2923 }
 0x9f7   : > { %v3079_v59 = vadd.f32 1.0, %v4155_v55  ;;  %v3355_v7 = vmul.f32 -1.442695, %v3017_v26  ;;  %v3000_v49 = vadd.f32 %v2979_v32, %v2924_v56  ;;  %v2926_v16 = vpop.xlane.xlu1 %2925 }
 0x9f8   : > { %v3356_v47 = vmul.f32 -1.442695, %v3018_v62  ;;  %v3001_v61 = vadd.f32 %v2981_v41, %v2926_v16 }
 0x9f9   : > { %4166 = vrcp.f32 %v3079_v59  ;;  %v3023_v20 = vadd.f32 %v5259_v25, %v3000_v49 }
 0x9fa   : > { %v4157_v8 = vpop.eup %4156  ;;  %4168 = vpow2.f32 %v3355_v7  ;;  %v3024_v3 = vadd.f32 %v5259_v25, %v3001_v61  ;;  %v2920_v43 = vpop.xlane.xlu0 %2919 }
 0x9fb   : > { %v3077_v42 = vadd.f32 1.0, %v4157_v8  ;;  %4170 = vpow2.f32 %v3356_v47  ;;  %v3361_v21 = vmul.f32 -1.442695, %v3023_v20  ;;  %v2998_v45 = vadd.f32 %v2975_v14, %v2920_v43  ;;  %v2922_v23 = vpop.xlane.xlu1 %2921 }
 0x9fc   : > { %v4159_v40 = vpop.eup %4158  ;;  %v3362_v63 = vmul.f32 -1.442695, %v3024_v3  ;;  %v2999_v12 = vadd.f32 %v2977_v31, %v2922_v23 }
 0x9fd   : > { %4172 = vrcp.f32 %v3077_v42  ;;  %v3078_v54 = vadd.f32 1.0, %v4159_v40  ;;  %v3021_v51 = vadd.f32 %v5259_v25, %v2998_v45 }
 0x9fe   : > { %v4161_v53 = vpop.eup %4160  ;;  %4174 = vpow2.f32 %v3361_v21  ;;  %v3022_v60 = vadd.f32 %v5259_v25, %v2999_v12  ;;  %v2932_v10 = vpop.xlane.xlu0 %2931 }
 0x9ff   : > { %4176 = vrcp.f32 %v3078_v54  ;;  %v3080_v37 = vadd.f32 1.0, %v4161_v53  ;;  %v3359_v24 = vmul.f32 -1.442695, %v3021_v51  ;;  %v2934_v29 = vpop.xlane.xlu1 %2933 }
 0xa00   : > { %4178 = vpow2.f32 %v3362_v63  ;;  %v3360_v14 = vmul.f32 -1.442695, %v3022_v60 }
 0xa01   : > { %4180 = vrcp.f32 %v3080_v37 }
 0xa02   : > { %v4163_v32 = vpop.eup %4162  ;;  %4182 = vpow2.f32 %v3359_v24  ;;  %v2928_v31 = vpop.xlane.xlu0 %2927 }
 0xa03   : > { %v4165_v41 = vpop.eup %4164  ;;  %v3083_v27 = vadd.f32 1.0, %v4163_v32  ;;  %4184 = vpow2.f32 %v3360_v14  ;;  %v3002_v15 = vadd.f32 %v5257_v1, %v2928_v31  ;;  %v2930_v44 = vpop.xlane.xlu1 %2929 }
 0xa04   : > { %v3084_v58 = vadd.f32 1.0, %v4165_v41  ;;  %v3003_v17 = vadd.f32 %v5261_v22, %v2930_v44 }
 0xa05   : > { %4186 = vrcp.f32 %v3083_v27  ;;  %v3025_v38 = vadd.f32 %v5259_v25, %v3002_v15 }
 0xa06   : > { %v4167_v19 = vpop.eup %4166  ;;  %4188 = vrcp.f32 %v3084_v58  ;;  %v3026_v6 = vadd.f32 %v5259_v25, %v3003_v17  ;;  %v2987_v34 = vpop.xlane.xlu0 %2986 }
 0xa07   : > { %v4169_v1 = vpop.eup %4168  ;;  %3128 = vst.msk [vmem:[%s5280_s15 + $0x10] sm:$0xff] %vm3125_vm3, %v4167_v19  ;;  %v3363_v50 = vmul.f32 -1.442695, %v3025_v38  ;;  %v3004_v13 = vadd.f32 %v2987_v34, %v2932_v10  ;;  %v2989_v35 = vpop.xlane.xlu1 %2988 }
 0xa08   : > { %v4171_v33 = vpop.eup %4170  ;;  %v3081_v30 = vadd.f32 1.0, %v4169_v1  ;;  %v3364_v0 = vmul.f32 -1.442695, %v3026_v6  ;;  %v3005_v57 = vadd.f32 %v2989_v35, %v2934_v29 }
 0xa09   : > { %v3082_v22 = vadd.f32 1.0, %v4171_v33  ;;  %4190 = vpow2.f32 %v3363_v50  ;;  %v3027_v36 = vadd.f32 %v5259_v25, %v3004_v13 }
 0xa0a   : > { %v4173_v48 = vpop.eup %4172  ;;  %4192 = vrcp.f32 %v3081_v30  ;;  %v3028_v28 = vadd.f32 %v5259_v25, %v3005_v57 }
 0xa0b   : > { %v4175_v11 = vpop.eup %4174  ;;  %3126 = vst.msk [vmem:[%s5280_s15] sm:$0xff] %vm3125_vm3, %v4173_v48  ;;  %4194 = vrcp.f32 %v3082_v22  ;;  %v3365_v39 = vmul.f32 -1.442695, %v3027_v36 }
 0xa0c   : > { %v4177_v5 = vpop.eup %4176  ;;  %v3087_v46 = vadd.f32 1.0, %v4175_v11  ;;  %4196 = vpow2.f32 %v3364_v0  ;;  %v3366_v4 = vmul.f32 -1.442695, %v3028_v28 }
 0xa0d   : > { %v4179_v9 = vpop.eup %4178  ;;  %3127 = vst.msk [vmem:[%s5280_s15 + $0x8] sm:$0xff] %vm3125_vm3, %v4177_v5  ;;  %4198 = vpow2.f32 %v3365_v39 }
 0xa0e   : > { %v4181_v18 = vpop.eup %4180  ;;  %4200 = vrcp.f32 %v3087_v46  ;;  %v3088_v2 = vadd.f32 1.0, %v4179_v9 }
 0xa0f   : > { %v4183_v25 = vpop.eup %4182  ;;  %3129 = vst.msk [vmem:[%s5280_s15 + $0x18] sm:$0xff] %vm3125_vm3, %v4181_v18  ;;  %4202 = vpow2.f32 %v3366_v4 }
 0xa10   : > { %v4185_v52 = vpop.eup %4184  ;;  %4204 = vrcp.f32 %v3088_v2  ;;  %v3085_v26 = vadd.f32 1.0, %v4183_v25 }
 0xa11   : > { %v3086_v55 = vadd.f32 1.0, %v4185_v52 }
 0xa12   : > { %v4187_v62 = vpop.eup %4186  ;;  %4206 = vrcp.f32 %v3085_v26 }
 0xa13   : > { %v4189_v56 = vpop.eup %4188  ;;  %3132 = vst.msk [vmem:[%s5280_s15 + $0x30] sm:$0xff] %vm3125_vm3, %v4187_v62  ;;  %4208 = vrcp.f32 %v3086_v55 }
 0xa14   : > { %3133 = vst.msk [vmem:[%s5280_s15 + $0x38] sm:$0xff] %vm3125_vm3, %v4189_v56 }
 0xa16   : > { %v4191_v59 = vpop.eup %4190 }
 0xa17   : > { %v4193_v7 = vpop.eup %4192  ;;  %v3089_v49 = vadd.f32 1.0, %v4191_v59 }
 0xa18   : > { %v4195_v16 = vpop.eup %4194  ;;  %3130 = vst.msk [vmem:[%s5280_s15 + $0x20] sm:$0xff] %vm3125_vm3, %v4193_v7 }
 0xa19   : > { %v4197_v47 = vpop.eup %4196  ;;  %3131 = vst.msk [vmem:[%s5280_s15 + $0x28] sm:$0xff] %vm3125_vm3, %v4195_v16  ;;  %4210 = vrcp.f32 %v3089_v49 }
 0xa1a   : > { %v4199_v61 = vpop.eup %4198  ;;  %v3090_v20 = vadd.f32 1.0, %v4197_v47 }
 0xa1b   : > { %v4201_v8 = vpop.eup %4200  ;;  %v3091_v3 = vadd.f32 1.0, %v4199_v61 }
 0xa1c   : > { %v4203_v43 = vpop.eup %4202  ;;  %3136 = vst.msk [vmem:[%s5280_s15 + $0x50] sm:$0xff] %vm3125_vm3, %v4201_v8  ;;  %4212 = vrcp.f32 %v3090_v20 }
 0xa1d   : > { %v4205_v42 = vpop.eup %4204  ;;  %4214 = vrcp.f32 %v3091_v3  ;;  %v3092_v21 = vadd.f32 1.0, %v4203_v43 }
 0xa1e   : > { %3137 = vst.msk [vmem:[%s5280_s15 + $0x58] sm:$0xff] %vm3125_vm3, %v4205_v42 }
 0xa1f   : > { %v4207_v45 = vpop.eup %4206  ;;  %4216 = vrcp.f32 %v3092_v21 }
 0xa20   : > { %v4209_v23 = vpop.eup %4208  ;;  %3134 = vst.msk [vmem:[%s5280_s15 + $0x40] sm:$0xff] %vm3125_vm3, %v4207_v45 }
 0xa21   : > { %3135 = vst.msk [vmem:[%s5280_s15 + $0x48] sm:$0xff] %vm3125_vm3, %v4209_v23 }
 0xa26   : > { %v4211_v40 = vpop.eup %4210 }
 0xa27   : > { %3138 = vst.msk [vmem:[%s5280_s15 + $0x60] sm:$0xff] %vm3125_vm3, %v4211_v40 }
 0xa29   : > { %v4213_v63 = vpop.eup %4212 }
 0xa2a   : > { %v4215_v12 = vpop.eup %4214  ;;  %3139 = vst.msk [vmem:[%s5280_s15 + $0x68] sm:$0xff] %vm3125_vm3, %v4213_v63 }
 0xa2b   : > { %3140 = vst.msk [vmem:[%s5280_s15 + $0x70] sm:$0xff] %vm3125_vm3, %v4215_v12 }
 0xa2c   : > { %v4217_v54 = vpop.eup %4216 }
 0xa2d   : > { %3141 = vst.msk [vmem:[%s5280_s15 + $0x78] sm:$0xff] %vm3125_vm3, %v4217_v54 }
 0xa2e PF: > { %s25_s27 = sadd.s32 1, %s4234_s27  }
 0xa2f   : > { %p22_p4 = scmp.ge.s32.totalorder %s25_s27, 4  }
 0xa31   :  { %24 = sbr.rel (!%p22_p4) target bundleno = 3 (0x3), region = 106 }

</bundles_post_ra>
